<compile_context>
chip_gen: v7x
topology: tpu7x:2x2x1
jax: 0.10.0
libtpu: 0.0.40
codegen_flags: <defaults>
</compile_context>

<pallas_src>
import jax
import jax.numpy as jnp
from jax import lax
from jax.experimental import pallas as pl
from jax.experimental.pallas import tpu as pltpu

BN_EPS = 1e-5


# ----------------------------------------------------------------------------
# Fused kernel: whole EdgeCycle forward in one pallas_call (gridless, VMEM)
# ----------------------------------------------------------------------------
def edge_cycle_kernel(
    eps_ref,                                   # SMEM (3,): [eps_cycle, eps_edge_1, eps_edge_2]
    e_ref, c_ref,                              # edge_attr [N_E,H] f32, cycle_attr [N_C,H] f32
    gE_ref,                                    # [4*n_c + 2*n_e, N_E] bf16: [e2c2_0;e2c2_1;e2c1_0;e2c1_1;e2e_0;e2e_1]
    gc2c_ref,                                  # [2*n_c, N_C] bf16:       [c2c_0; c2c_1]
    gc2e_ref,                                  # [4*n_e, N_C] bf16:       [c2e1_0;c2e1_1;c2e2_0;c2e2_1]
    pw1_ref,                                   # [4*H, 2*D] bf16: K-block i rows = [c1w1_i | e1w1_i]
    e1w1c_ref,                                 # [H, D]   bf16: edge_mlp_1 first layer, cycle_attr K-block
    # cycle_mlp_1 (BN/second layer), cycle_mlp_2, edge_mlp_1 (BN/second layer), edge_mlp_2
    c1g1_ref, c1t1_ref, c1w2_ref, c1g2_ref, c1t2_ref,
    c2w1_ref, c2g1_ref, c2t1_ref, c2w2_ref, c2g2_ref, c2t2_ref,
    e1g1_ref, e1t1_ref, e1w2_ref, e1g2_ref, e1t2_ref,
    e2w1_ref, e2g1_ref, e2t1_ref, e2w2_ref, e2g2_ref, e2t2_ref,
    edge_out_ref, cycle_out_ref,
):
    n_e, H = e_ref.shape
    n_c = c_ref.shape[0]
    D = c1g1_ref.shape[-1]                     # dense_dim

    # Cast MXU inputs exactly once.
    E_bf = e_ref[...].astype(jnp.bfloat16)
    C_bf = c_ref[...].astype(jnp.bfloat16)

    def mm(a_bf, b_bf):
        # bf16 MXU operands, f32 accumulation.
        return jnp.dot(a_bf, b_bf, preferred_element_type=jnp.float32)

    def bn_relu(h, g_ref, t_ref, out_dtype=jnp.float32):
        # Training-mode BatchNorm1d (biased batch variance) + ReLU, affine folded
        # to 2 VPU ops per element; rsqrt goes to the EUP slot.
        mu = jnp.mean(h, axis=0, keepdims=True)
        var = jnp.mean((h - mu) ** 2, axis=0, keepdims=True)
        scale = g_ref[...] * lax.rsqrt(var + BN_EPS)
        shift = t_ref[...] - mu * scale
        return jnp.maximum(h * scale + shift, 0.0).astype(out_dtype)

    # ---- single batched gather matmul on E (e->cycle AND e->edge linmap) ----
    slab_E = mm(gE_ref[...], E_bf)                              # [4n_c + 2n_e, H] f32
    # lift_aggr channel blocks (MXU-only consumers -> bf16 once)
    s_bf = [slab_E[i * n_c:(i + 1) * n_c].astype(jnp.bfloat16) for i in range(4)]
    # edge_linmap halves (VPU consumers -> stay f32)
    el = [slab_E[4 * n_c + i * n_e: 4 * n_c + (i + 1) * n_e] for i in range(2)]

    # cycle_linmap halves (VPU consumers -> stay f32)
    slab_c2c = mm(gc2c_ref[...], C_bf)                          # [2*n_c, H] f32
    cl = [slab_c2c[i * n_c:(i + 1) * n_c] for i in range(2)]

    # ---- cycle_mlp_1 & edge_mlp_1 first layers (packed N = 2D matmuls) ------
    pw1 = pw1_ref[...]
    h_both = (mm(s_bf[0], pw1[0 * H:1 * H]) + mm(s_bf[1], pw1[1 * H:2 * H])
              + mm(s_bf[2], pw1[2 * H:3 * H]) + mm(s_bf[3], pw1[3 * H:4 * H]))   # [n_c, 2D]
    h_c1 = h_both[:, :D]                                        # cycle_mlp_1 pre-BN
    h_e1 = h_both[:, D:] + mm(C_bf, e1w1c_ref[...])             # edge_mlp_1 pre-BN (+cycle_attr block)

    a_c1 = bn_relu(h_c1, c1g1_ref, c1t1_ref, jnp.bfloat16)
    m1 = bn_relu(mm(a_c1, c1w2_ref[...]), c1g2_ref, c1t2_ref)   # [n_c, 2H] f32 (VPU consumer)

    a_e1 = bn_relu(h_e1, e1g1_ref, e1t1_ref, jnp.bfloat16)
    u_bf = bn_relu(mm(a_e1, e1w2_ref[...]), e1g2_ref, e1t2_ref, jnp.bfloat16)    # [n_c, H]

    # ---- cycle_mlp_2((1+eps_cycle)*cycle_linmap + cycle_mlp_1(lift_aggr)) ---
    # First layer fused as split-K over the two H-channel halves (one matmul saved).
    ec = 1.0 + eps_ref[0]
    x0 = (ec * cl[0] + m1[:, :H]).astype(jnp.bfloat16)
    x1 = (ec * cl[1] + m1[:, H:]).astype(jnp.bfloat16)
    c2w1 = c2w1_ref[...]
    h = mm(x0, c2w1[:H]) + mm(x1, c2w1[H:])
    a = bn_relu(h, c2g1_ref, c2t1_ref, jnp.bfloat16)
    cycle_out_ref[...] = bn_relu(mm(a, c2w2_ref[...]), c2g2_ref, c2t2_ref,
                                 cycle_out_ref.dtype)

    # ---- gathers onto edges of edge_mlp_1 output (lvl_aggr_1 / lvl_aggr_2) --
    slab_c2e = mm(gc2e_ref[...], u_bf)                          # [4*n_e, H] f32
    t = [slab_c2e[i * n_e:(i + 1) * n_e] for i in range(4)]

    # ---- edge_mlp_2((1+e1)*edge_linmap + (1+e2)*lvl_aggr_1 + lvl_aggr_2) ----
    e1 = 1.0 + eps_ref[1]
    e2 = 1.0 + eps_ref[2]
    x_lo = (e1 * el[0] + e2 * t[0] + t[2]).astype(jnp.bfloat16)   # low  H channels
    x_hi = (e1 * el[1] + e2 * t[1] + t[3]).astype(jnp.bfloat16)   # high H channels
    e2w1 = e2w1_ref[...]
    h = mm(x_lo, e2w1[:H]) + mm(x_hi, e2w1[H:])
    a = bn_relu(h, e2g1_ref, e2t1_ref, jnp.bfloat16)
    edge_out_ref[...] = bn_relu(mm(a, e2w2_ref[...]), e2g2_ref, e2t2_ref,
                                edge_out_ref.dtype)


# ----------------------------------------------------------------------------
# Wrapper: single fused pallas_call, everything resident in VMEM (no grid)
# ----------------------------------------------------------------------------
def edge_cycle_forward(edge_attr, cycle_attr, eps, gather_stacks, mlp_params,
                       out_dtype=jnp.bfloat16):
    n_e, H = edge_attr.shape
    n_c = cycle_attr.shape[0]
    # Keep slab row-slices sublane-tile aligned (f32 slabs -> multiple of 8).
    # TODO(synk): pad rows + mask BN statistics for arbitrary graph sizes.
    assert n_e % 8 == 0 and n_c % 8 == 0, "row counts must be multiples of 8"

    ge2c, gc2c, gc2e, ge2e = gather_stacks
    c1, c2, e1m, e2m = mlp_params
    c1w1, c1g1, c1t1, c1w2, c1g2, c1t2 = c1
    c2w1, c2g1, c2t1, c2w2, c2g2, c2t2 = c2
    e1w1, e1g1, e1t1, e1w2, e1g2, e1t2 = e1m
    e2w1, e2g1, e2t1, e2w2, e2g2, e2t2 = e2m

    # Merge the two gather families that share RHS E into one stacked matrix.
    gE = jnp.concatenate([ge2c, ge2e], axis=0)                  # [4n_c + 2n_e, N_E]

    # Column-pack the first-layer weights of cycle_mlp_1 / edge_mlp_1 per K-block
    # so each split-K step is a single N=2D matmul.
    pw1 = jnp.concatenate(
        [jnp.concatenate([c1w1[i * H:(i + 1) * H], e1w1[i * H:(i + 1) * H]], axis=1)
         for i in range(4)], axis=0)                            # [4H, 2D] bf16
    e1w1c = e1w1[4 * H:5 * H]                                   # [H, D]  bf16

    vmem = pl.BlockSpec(memory_space=pltpu.MemorySpace.VMEM)
    smem = pl.BlockSpec(memory_space=pltpu.MemorySpace.SMEM)

    args = (eps, edge_attr, cycle_attr, gE, gc2c, gc2e, pw1, e1w1c,
            c1g1, c1t1, c1w2, c1g2, c1t2,
            c2w1, c2g1, c2t1, c2w2, c2g2, c2t2,
            e1g1, e1t1, e1w2, e1g2, e1t2,
            e2w1, e2g1, e2t1, e2w2, e2g2, e2t2)

    return pl.pallas_call(
        edge_cycle_kernel,
        out_shape=(jax.ShapeDtypeStruct((n_e, H), out_dtype),   # edge_out
                   jax.ShapeDtypeStruct((n_c, H), out_dtype)),  # cycle_out
        in_specs=[smem] + [vmem] * (len(args) - 1),
        out_specs=(vmem, vmem),
        # Explicit VMEM budget: safe on all generations (v7x scoped default 32 MiB).
        compiler_params=pltpu.CompilerParams(vmem_limit_bytes=32 * 1024 * 1024),
    )(*args)


# ----------------------------------------------------------------------------
# Parameter init (PyTorch-like defaults; weights pre-cast to bf16 for the MXU)
# ----------------------------------------------------------------------------
def init_mlp2(key, d_in, d_hidden, d_out):
    k1, k2 = jax.random.split(key)
    b1 = 1.0 / float(d_in) ** 0.5
    b2 = 1.0 / float(d_hidden) ** 0.5
    w1 = jax.random.uniform(k1, (d_in, d_hidden), jnp.float32, -b1, b1).astype(jnp.bfloat16)
    w2 = jax.random.uniform(k2, (d_hidden, d_out), jnp.float32, -b2, b2).astype(jnp.bfloat16)
    g1 = jnp.ones((1, d_hidden), jnp.float32)
    t1 = jnp.zeros((1, d_hidden), jnp.float32)
    g2 = jnp.ones((1, d_out), jnp.float32)
    t2 = jnp.zeros((1, d_out), jnp.float32)
    # Linear biases intentionally omitted: training-mode BatchNorm subtracts the
    # batch mean directly after the Linear, cancelling the bias exactly.
    return (w1, g1, t1, w2, g2, t2)


if __name__ == "__main__":
    H = 128          # hidden_dim (module default)  -> lane-dense channels
    D = 128          # dense_dim  (module default)
    N_E = 32         # total edge-ptensor rows
    N_C = 16         # total cycle-ptensor rows

    key = jax.random.PRNGKey(0)
    ks = jax.random.split(key, 20)

    edge_attr = jax.random.normal(ks[0], (N_E, H), jnp.float32)
    cycle_attr = jax.random.normal(ks[1], (N_C, H), jnp.float32)

    def gmat(k, n_out, n_in):
        # 0/1 row-aggregation matrix (exact in bf16) standing in for a ptens gather.
        return jax.random.bernoulli(k, 0.3, (n_out, n_in)).astype(jnp.bfloat16)

    # Stacked gather matrices (one batched MXU op per family inside the kernel):
    #   ge2c : [e2c2_0; e2c2_1; e2c1_0; e2c1_1]  ->  lift_aggr channel blocks
    #   gc2c : [c2c_0;  c2c_1]                   ->  cycle_linmap halves
    #   gc2e : [c2e1_0; c2e1_1; c2e2_0; c2e2_1]  ->  lvl_aggr_1 / lvl_aggr_2 halves
    #   ge2e : [e2e_0;  e2e_1]                   ->  edge_linmap halves
    ge2c = jnp.concatenate([gmat(ks[2], N_C, N_E), gmat(ks[3], N_C, N_E),
                            gmat(ks[4], N_C, N_E), gmat(ks[5], N_C, N_E)], axis=0)
    gc2c = jnp.concatenate([gmat(ks[6], N_C, N_C), gmat(ks[7], N_C, N_C)], axis=0)
    gc2e = jnp.concatenate([gmat(ks[8], N_E, N_C), gmat(ks[9], N_E, N_C),
                            gmat(ks[10], N_E, N_C), gmat(ks[11], N_E, N_C)], axis=0)
    ge2e = jnp.concatenate([gmat(ks[12], N_E, N_E), gmat(ks[13], N_E, N_E)], axis=0)
    gather_stacks = (ge2c, gc2c, gc2e, ge2e)

    cycle_mlp_1_p = init_mlp2(ks[14], 4 * H, D, 2 * H)
    cycle_mlp_2_p = init_mlp2(ks[15], 2 * H, D, H)
    edge_mlp_1_p = init_mlp2(ks[16], 5 * H, D, H)
    edge_mlp_2_p = init_mlp2(ks[17], 2 * H, D, H)
    mlp_params = (cycle_mlp_1_p, cycle_mlp_2_p, edge_mlp_1_p, edge_mlp_2_p)

    # torch init: eps_cycle = eps_edge_1 = eps_edge_2 = 0.0
    eps = jnp.zeros((3,), jnp.float32)

    fwd = jax.jit(edge_cycle_forward)
    edge_out, cycle_out = fwd(edge_attr, cycle_attr, eps, gather_stacks, mlp_params)
    jax.block_until_ready((edge_out, cycle_out))

    assert edge_out.shape == (N_E, H) and cycle_out.shape == (N_C, H)
    assert bool(jnp.all(jnp.isfinite(edge_out.astype(jnp.float32))))
    assert bool(jnp.all(jnp.isfinite(cycle_out.astype(jnp.float32))))
    print("KERNEL_OK")
</pallas_src>

<mosaic_0001>
module attributes {stable_mosaic.version = 11 : i64} {
  func.func @edge_cycle_kernel(%arg0: memref<3xf32, #tpu.memory_space<smem>>, %arg1: memref<32x128xf32, #tpu.memory_space<vmem>>, %arg2: memref<16x128xf32, #tpu.memory_space<vmem>>, %arg3: memref<128x32xbf16, #tpu.memory_space<vmem>>, %arg4: memref<32x16xbf16, #tpu.memory_space<vmem>>, %arg5: memref<128x16xbf16, #tpu.memory_space<vmem>>, %arg6: memref<512x256xbf16, #tpu.memory_space<vmem>>, %arg7: memref<128x128xbf16, #tpu.memory_space<vmem>>, %arg8: memref<1x128xf32, #tpu.memory_space<vmem>>, %arg9: memref<1x128xf32, #tpu.memory_space<vmem>>, %arg10: memref<128x256xbf16, #tpu.memory_space<vmem>>, %arg11: memref<1x256xf32, #tpu.memory_space<vmem>>, %arg12: memref<1x256xf32, #tpu.memory_space<vmem>>, %arg13: memref<256x128xbf16, #tpu.memory_space<vmem>>, %arg14: memref<1x128xf32, #tpu.memory_space<vmem>>, %arg15: memref<1x128xf32, #tpu.memory_space<vmem>>, %arg16: memref<128x128xbf16, #tpu.memory_space<vmem>>, %arg17: memref<1x128xf32, #tpu.memory_space<vmem>>, %arg18: memref<1x128xf32, #tpu.memory_space<vmem>>, %arg19: memref<1x128xf32, #tpu.memory_space<vmem>>, %arg20: memref<1x128xf32, #tpu.memory_space<vmem>>, %arg21: memref<128x128xbf16, #tpu.memory_space<vmem>>, %arg22: memref<1x128xf32, #tpu.memory_space<vmem>>, %arg23: memref<1x128xf32, #tpu.memory_space<vmem>>, %arg24: memref<256x128xbf16, #tpu.memory_space<vmem>>, %arg25: memref<1x128xf32, #tpu.memory_space<vmem>>, %arg26: memref<1x128xf32, #tpu.memory_space<vmem>>, %arg27: memref<128x128xbf16, #tpu.memory_space<vmem>>, %arg28: memref<1x128xf32, #tpu.memory_space<vmem>>, %arg29: memref<1x128xf32, #tpu.memory_space<vmem>>, %arg30: memref<32x128xbf16, #tpu.memory_space<vmem>>, %arg31: memref<16x128xbf16, #tpu.memory_space<vmem>>) attributes {dimension_semantics = [], scalar_prefetch = 0 : i64, scratch_operands = 0 : i64, tpu.core_type = #tpu.core_type<tc>} {
    %c0 = arith.constant 0 : index
    %c0_0 = arith.constant 0 : index
    %0 = vector.load %arg1[%c0, %c0_0] : memref<32x128xf32, #tpu.memory_space<vmem>>, vector<32x128xf32>
    %1 = arith.truncf %0 : vector<32x128xf32> to vector<32x128xbf16>
    %c0_1 = arith.constant 0 : index
    %c0_2 = arith.constant 0 : index
    %2 = vector.load %arg2[%c0_1, %c0_2] : memref<16x128xf32, #tpu.memory_space<vmem>>, vector<16x128xf32>
    %3 = arith.truncf %2 : vector<16x128xf32> to vector<16x128xbf16>
    %c0_3 = arith.constant 0 : index
    %c0_4 = arith.constant 0 : index
    %4 = vector.load %arg3[%c0_3, %c0_4] : memref<128x32xbf16, #tpu.memory_space<vmem>>, vector<128x32xbf16>
    %cst = arith.constant dense<0.000000e+00> : vector<128x128xf32>
    %5 = tpu.matmul %4, %1, %cst {dimension_numbers = #tpu.dot_dimension_numbers<[1], [0], [0], [1], [0, 0, 1, 1], [], []>} : vector<128x32xbf16>, vector<32x128xbf16>, vector<128x128xf32> -> vector<128x128xf32>
    %6 = vector.extract_strided_slice %5 {offsets = [0, 0], sizes = [16, 128], strides = [1, 1]} : vector<128x128xf32> to vector<16x128xf32>
    %7 = arith.truncf %6 : vector<16x128xf32> to vector<16x128xbf16>
    %8 = vector.extract_strided_slice %5 {offsets = [16, 0], sizes = [16, 128], strides = [1, 1]} : vector<128x128xf32> to vector<16x128xf32>
    %9 = arith.truncf %8 : vector<16x128xf32> to vector<16x128xbf16>
    %10 = vector.extract_strided_slice %5 {offsets = [32, 0], sizes = [16, 128], strides = [1, 1]} : vector<128x128xf32> to vector<16x128xf32>
    %11 = arith.truncf %10 : vector<16x128xf32> to vector<16x128xbf16>
    %12 = vector.extract_strided_slice %5 {offsets = [48, 0], sizes = [16, 128], strides = [1, 1]} : vector<128x128xf32> to vector<16x128xf32>
    %13 = arith.truncf %12 : vector<16x128xf32> to vector<16x128xbf16>
    %14 = vector.extract_strided_slice %5 {offsets = [64, 0], sizes = [32, 128], strides = [1, 1]} : vector<128x128xf32> to vector<32x128xf32>
    %15 = vector.extract_strided_slice %5 {offsets = [96, 0], sizes = [32, 128], strides = [1, 1]} : vector<128x128xf32> to vector<32x128xf32>
    %c0_5 = arith.constant 0 : index
    %c0_6 = arith.constant 0 : index
    %16 = vector.load %arg4[%c0_5, %c0_6] : memref<32x16xbf16, #tpu.memory_space<vmem>>, vector<32x16xbf16>
    %cst_7 = arith.constant dense<0.000000e+00> : vector<32x128xf32>
    %17 = tpu.matmul %16, %3, %cst_7 {dimension_numbers = #tpu.dot_dimension_numbers<[1], [0], [0], [1], [0, 0, 1, 1], [], []>} : vector<32x16xbf16>, vector<16x128xbf16>, vector<32x128xf32> -> vector<32x128xf32>
    %18 = vector.extract_strided_slice %17 {offsets = [0, 0], sizes = [16, 128], strides = [1, 1]} : vector<32x128xf32> to vector<16x128xf32>
    %19 = vector.extract_strided_slice %17 {offsets = [16, 0], sizes = [16, 128], strides = [1, 1]} : vector<32x128xf32> to vector<16x128xf32>
    %c0_8 = arith.constant 0 : index
    %c0_9 = arith.constant 0 : index
    %20 = vector.load %arg6[%c0_8, %c0_9] : memref<512x256xbf16, #tpu.memory_space<vmem>>, vector<512x256xbf16>
    %21 = vector.extract_strided_slice %20 {offsets = [0, 0], sizes = [128, 256], strides = [1, 1]} : vector<512x256xbf16> to vector<128x256xbf16>
    %cst_10 = arith.constant dense<0.000000e+00> : vector<16x256xf32>
    %22 = tpu.matmul %7, %21, %cst_10 {dimension_numbers = #tpu.dot_dimension_numbers<[1], [0], [0], [1], [0, 0, 1, 1], [], []>} : vector<16x128xbf16>, vector<128x256xbf16>, vector<16x256xf32> -> vector<16x256xf32>
    %23 = vector.extract_strided_slice %20 {offsets = [128, 0], sizes = [128, 256], strides = [1, 1]} : vector<512x256xbf16> to vector<128x256xbf16>
    %cst_11 = arith.constant dense<0.000000e+00> : vector<16x256xf32>
    %24 = tpu.matmul %9, %23, %cst_11 {dimension_numbers = #tpu.dot_dimension_numbers<[1], [0], [0], [1], [0, 0, 1, 1], [], []>} : vector<16x128xbf16>, vector<128x256xbf16>, vector<16x256xf32> -> vector<16x256xf32>
    %25 = arith.addf %22, %24 : vector<16x256xf32>
    %26 = vector.extract_strided_slice %20 {offsets = [256, 0], sizes = [128, 256], strides = [1, 1]} : vector<512x256xbf16> to vector<128x256xbf16>
    %cst_12 = arith.constant dense<0.000000e+00> : vector<16x256xf32>
    %27 = tpu.matmul %11, %26, %cst_12 {dimension_numbers = #tpu.dot_dimension_numbers<[1], [0], [0], [1], [0, 0, 1, 1], [], []>} : vector<16x128xbf16>, vector<128x256xbf16>, vector<16x256xf32> -> vector<16x256xf32>
    %28 = arith.addf %25, %27 : vector<16x256xf32>
    %29 = vector.extract_strided_slice %20 {offsets = [384, 0], sizes = [128, 256], strides = [1, 1]} : vector<512x256xbf16> to vector<128x256xbf16>
    %cst_13 = arith.constant dense<0.000000e+00> : vector<16x256xf32>
    %30 = tpu.matmul %13, %29, %cst_13 {dimension_numbers = #tpu.dot_dimension_numbers<[1], [0], [0], [1], [0, 0, 1, 1], [], []>} : vector<16x128xbf16>, vector<128x256xbf16>, vector<16x256xf32> -> vector<16x256xf32>
    %31 = arith.addf %28, %30 : vector<16x256xf32>
    %32 = vector.extract_strided_slice %31 {offsets = [0, 0], sizes = [16, 128], strides = [1, 1]} : vector<16x256xf32> to vector<16x128xf32>
    %33 = vector.extract_strided_slice %31 {offsets = [0, 128], sizes = [16, 128], strides = [1, 1]} : vector<16x256xf32> to vector<16x128xf32>
    %c0_14 = arith.constant 0 : index
    %c0_15 = arith.constant 0 : index
    %34 = vector.load %arg7[%c0_14, %c0_15] : memref<128x128xbf16, #tpu.memory_space<vmem>>, vector<128x128xbf16>
    %cst_16 = arith.constant dense<0.000000e+00> : vector<16x128xf32>
    %35 = tpu.matmul %3, %34, %cst_16 {dimension_numbers = #tpu.dot_dimension_numbers<[1], [0], [0], [1], [0, 0, 1, 1], [], []>} : vector<16x128xbf16>, vector<128x128xbf16>, vector<16x128xf32> -> vector<16x128xf32>
    %36 = arith.addf %33, %35 : vector<16x128xf32>
    %cst_17 = arith.constant dense<0.000000e+00> : vector<128xf32>
    %37 = vector.multi_reduction <add>, %32, %cst_17 [0] : vector<16x128xf32> to vector<128xf32>
    %38 = vector.shape_cast %37 : vector<128xf32> to vector<1x128xf32>
    %cst_18 = arith.constant 1.600000e+01 : f32
    %39 = vector.broadcast %cst_18 : f32 to vector<1x128xf32>
    %40 = arith.divf %38, %39 : vector<1x128xf32>
    %41 = vector.broadcast %40 : vector<1x128xf32> to vector<16x128xf32>
    %42 = arith.subf %32, %41 : vector<16x128xf32>
    %43 = arith.mulf %42, %42 : vector<16x128xf32>
    %cst_19 = arith.constant dense<0.000000e+00> : vector<128xf32>
    %44 = vector.multi_reduction <add>, %43, %cst_19 [0] : vector<16x128xf32> to vector<128xf32>
    %45 = vector.shape_cast %44 : vector<128xf32> to vector<1x128xf32>
    %cst_20 = arith.constant 1.600000e+01 : f32
    %46 = vector.broadcast %cst_20 : f32 to vector<1x128xf32>
    %47 = arith.divf %45, %46 : vector<1x128xf32>
    %c0_21 = arith.constant 0 : index
    %c0_22 = arith.constant 0 : index
    %48 = vector.load %arg8[%c0_21, %c0_22] : memref<1x128xf32, #tpu.memory_space<vmem>>, vector<1x128xf32>
    %cst_23 = arith.constant 9.99999974E-6 : f32
    %49 = vector.broadcast %cst_23 : f32 to vector<1x128xf32>
    %50 = arith.addf %47, %49 : vector<1x128xf32>
    %51 = math.rsqrt %50 : vector<1x128xf32>
    %52 = arith.mulf %48, %51 : vector<1x128xf32>
    %c0_24 = arith.constant 0 : index
    %c0_25 = arith.constant 0 : index
    %53 = vector.load %arg9[%c0_24, %c0_25] : memref<1x128xf32, #tpu.memory_space<vmem>>, vector<1x128xf32>
    %54 = arith.mulf %40, %52 : vector<1x128xf32>
    %55 = arith.subf %53, %54 : vector<1x128xf32>
    %56 = vector.broadcast %52 : vector<1x128xf32> to vector<16x128xf32>
    %57 = arith.mulf %32, %56 : vector<16x128xf32>
    %58 = vector.broadcast %55 : vector<1x128xf32> to vector<16x128xf32>
    %59 = arith.addf %57, %58 : vector<16x128xf32>
    %cst_26 = arith.constant 0.000000e+00 : f32
    %60 = vector.broadcast %cst_26 : f32 to vector<16x128xf32>
    %61 = arith.maximumf %59, %60 : vector<16x128xf32>
    %62 = arith.truncf %61 : vector<16x128xf32> to vector<16x128xbf16>
    %c0_27 = arith.constant 0 : index
    %c0_28 = arith.constant 0 : index
    %63 = vector.load %arg10[%c0_27, %c0_28] : memref<128x256xbf16, #tpu.memory_space<vmem>>, vector<128x256xbf16>
    %cst_29 = arith.constant dense<0.000000e+00> : vector<16x256xf32>
    %64 = tpu.matmul %62, %63, %cst_29 {dimension_numbers = #tpu.dot_dimension_numbers<[1], [0], [0], [1], [0, 0, 1, 1], [], []>} : vector<16x128xbf16>, vector<128x256xbf16>, vector<16x256xf32> -> vector<16x256xf32>
    %cst_30 = arith.constant dense<0.000000e+00> : vector<256xf32>
    %65 = vector.multi_reduction <add>, %64, %cst_30 [0] : vector<16x256xf32> to vector<256xf32>
    %66 = vector.shape_cast %65 : vector<256xf32> to vector<1x256xf32>
    %cst_31 = arith.constant 1.600000e+01 : f32
    %67 = vector.broadcast %cst_31 : f32 to vector<1x256xf32>
    %68 = arith.divf %66, %67 : vector<1x256xf32>
    %69 = vector.broadcast %68 : vector<1x256xf32> to vector<16x256xf32>
    %70 = arith.subf %64, %69 : vector<16x256xf32>
    %71 = arith.mulf %70, %70 : vector<16x256xf32>
    %cst_32 = arith.constant dense<0.000000e+00> : vector<256xf32>
    %72 = vector.multi_reduction <add>, %71, %cst_32 [0] : vector<16x256xf32> to vector<256xf32>
    %73 = vector.shape_cast %72 : vector<256xf32> to vector<1x256xf32>
    %cst_33 = arith.constant 1.600000e+01 : f32
    %74 = vector.broadcast %cst_33 : f32 to vector<1x256xf32>
    %75 = arith.divf %73, %74 : vector<1x256xf32>
    %c0_34 = arith.constant 0 : index
    %c0_35 = arith.constant 0 : index
    %76 = vector.load %arg11[%c0_34, %c0_35] : memref<1x256xf32, #tpu.memory_space<vmem>>, vector<1x256xf32>
    %cst_36 = arith.constant 9.99999974E-6 : f32
    %77 = vector.broadcast %cst_36 : f32 to vector<1x256xf32>
    %78 = arith.addf %75, %77 : vector<1x256xf32>
    %79 = math.rsqrt %78 : vector<1x256xf32>
    %80 = arith.mulf %76, %79 : vector<1x256xf32>
    %c0_37 = arith.constant 0 : index
    %c0_38 = arith.constant 0 : index
    %81 = vector.load %arg12[%c0_37, %c0_38] : memref<1x256xf32, #tpu.memory_space<vmem>>, vector<1x256xf32>
    %82 = arith.mulf %68, %80 : vector<1x256xf32>
    %83 = arith.subf %81, %82 : vector<1x256xf32>
    %84 = vector.broadcast %80 : vector<1x256xf32> to vector<16x256xf32>
    %85 = arith.mulf %64, %84 : vector<16x256xf32>
    %86 = vector.broadcast %83 : vector<1x256xf32> to vector<16x256xf32>
    %87 = arith.addf %85, %86 : vector<16x256xf32>
    %cst_39 = arith.constant 0.000000e+00 : f32
    %88 = vector.broadcast %cst_39 : f32 to vector<16x256xf32>
    %89 = arith.maximumf %87, %88 : vector<16x256xf32>
    %cst_40 = arith.constant dense<0.000000e+00> : vector<128xf32>
    %90 = vector.multi_reduction <add>, %36, %cst_40 [0] : vector<16x128xf32> to vector<128xf32>
    %91 = vector.shape_cast %90 : vector<128xf32> to vector<1x128xf32>
    %cst_41 = arith.constant 1.600000e+01 : f32
    %92 = vector.broadcast %cst_41 : f32 to vector<1x128xf32>
    %93 = arith.divf %91, %92 : vector<1x128xf32>
    %94 = vector.broadcast %93 : vector<1x128xf32> to vector<16x128xf32>
    %95 = arith.subf %36, %94 : vector<16x128xf32>
    %96 = arith.mulf %95, %95 : vector<16x128xf32>
    %cst_42 = arith.constant dense<0.000000e+00> : vector<128xf32>
    %97 = vector.multi_reduction <add>, %96, %cst_42 [0] : vector<16x128xf32> to vector<128xf32>
    %98 = vector.shape_cast %97 : vector<128xf32> to vector<1x128xf32>
    %cst_43 = arith.constant 1.600000e+01 : f32
    %99 = vector.broadcast %cst_43 : f32 to vector<1x128xf32>
    %100 = arith.divf %98, %99 : vector<1x128xf32>
    %c0_44 = arith.constant 0 : index
    %c0_45 = arith.constant 0 : index
    %101 = vector.load %arg19[%c0_44, %c0_45] : memref<1x128xf32, #tpu.memory_space<vmem>>, vector<1x128xf32>
    %cst_46 = arith.constant 9.99999974E-6 : f32
    %102 = vector.broadcast %cst_46 : f32 to vector<1x128xf32>
    %103 = arith.addf %100, %102 : vector<1x128xf32>
    %104 = math.rsqrt %103 : vector<1x128xf32>
    %105 = arith.mulf %101, %104 : vector<1x128xf32>
    %c0_47 = arith.constant 0 : index
    %c0_48 = arith.constant 0 : index
    %106 = vector.load %arg20[%c0_47, %c0_48] : memref<1x128xf32, #tpu.memory_space<vmem>>, vector<1x128xf32>
    %107 = arith.mulf %93, %105 : vector<1x128xf32>
    %108 = arith.subf %106, %107 : vector<1x128xf32>
    %109 = vector.broadcast %105 : vector<1x128xf32> to vector<16x128xf32>
    %110 = arith.mulf %36, %109 : vector<16x128xf32>
    %111 = vector.broadcast %108 : vector<1x128xf32> to vector<16x128xf32>
    %112 = arith.addf %110, %111 : vector<16x128xf32>
    %cst_49 = arith.constant 0.000000e+00 : f32
    %113 = vector.broadcast %cst_49 : f32 to vector<16x128xf32>
    %114 = arith.maximumf %112, %113 : vector<16x128xf32>
    %115 = arith.truncf %114 : vector<16x128xf32> to vector<16x128xbf16>
    %c0_50 = arith.constant 0 : index
    %c0_51 = arith.constant 0 : index
    %116 = vector.load %arg21[%c0_50, %c0_51] : memref<128x128xbf16, #tpu.memory_space<vmem>>, vector<128x128xbf16>
    %cst_52 = arith.constant dense<0.000000e+00> : vector<16x128xf32>
    %117 = tpu.matmul %115, %116, %cst_52 {dimension_numbers = #tpu.dot_dimension_numbers<[1], [0], [0], [1], [0, 0, 1, 1], [], []>} : vector<16x128xbf16>, vector<128x128xbf16>, vector<16x128xf32> -> vector<16x128xf32>
    %cst_53 = arith.constant dense<0.000000e+00> : vector<128xf32>
    %118 = vector.multi_reduction <add>, %117, %cst_53 [0] : vector<16x128xf32> to vector<128xf32>
    %119 = vector.shape_cast %118 : vector<128xf32> to vector<1x128xf32>
    %cst_54 = arith.constant 1.600000e+01 : f32
    %120 = vector.broadcast %cst_54 : f32 to vector<1x128xf32>
    %121 = arith.divf %119, %120 : vector<1x128xf32>
    %122 = vector.broadcast %121 : vector<1x128xf32> to vector<16x128xf32>
    %123 = arith.subf %117, %122 : vector<16x128xf32>
    %124 = arith.mulf %123, %123 : vector<16x128xf32>
    %cst_55 = arith.constant dense<0.000000e+00> : vector<128xf32>
    %125 = vector.multi_reduction <add>, %124, %cst_55 [0] : vector<16x128xf32> to vector<128xf32>
    %126 = vector.shape_cast %125 : vector<128xf32> to vector<1x128xf32>
    %cst_56 = arith.constant 1.600000e+01 : f32
    %127 = vector.broadcast %cst_56 : f32 to vector<1x128xf32>
    %128 = arith.divf %126, %127 : vector<1x128xf32>
    %c0_57 = arith.constant 0 : index
    %c0_58 = arith.constant 0 : index
    %129 = vector.load %arg22[%c0_57, %c0_58] : memref<1x128xf32, #tpu.memory_space<vmem>>, vector<1x128xf32>
    %cst_59 = arith.constant 9.99999974E-6 : f32
    %130 = vector.broadcast %cst_59 : f32 to vector<1x128xf32>
    %131 = arith.addf %128, %130 : vector<1x128xf32>
    %132 = math.rsqrt %131 : vector<1x128xf32>
    %133 = arith.mulf %129, %132 : vector<1x128xf32>
    %c0_60 = arith.constant 0 : index
    %c0_61 = arith.constant 0 : index
    %134 = vector.load %arg23[%c0_60, %c0_61] : memref<1x128xf32, #tpu.memory_space<vmem>>, vector<1x128xf32>
    %135 = arith.mulf %121, %133 : vector<1x128xf32>
    %136 = arith.subf %134, %135 : vector<1x128xf32>
    %137 = vector.broadcast %133 : vector<1x128xf32> to vector<16x128xf32>
    %138 = arith.mulf %117, %137 : vector<16x128xf32>
    %139 = vector.broadcast %136 : vector<1x128xf32> to vector<16x128xf32>
    %140 = arith.addf %138, %139 : vector<16x128xf32>
    %cst_62 = arith.constant 0.000000e+00 : f32
    %141 = vector.broadcast %cst_62 : f32 to vector<16x128xf32>
    %142 = arith.maximumf %140, %141 : vector<16x128xf32>
    %143 = arith.truncf %142 : vector<16x128xf32> to vector<16x128xbf16>
    %c0_63 = arith.constant 0 : index
    %144 = memref.load %arg0[%c0_63] : memref<3xf32, #tpu.memory_space<smem>>
    %cst_64 = arith.constant 1.000000e+00 : f32
    %145 = arith.addf %cst_64, %144 : f32
    %146 = vector.broadcast %145 : f32 to vector<16x128xf32>
    %147 = arith.mulf %146, %18 : vector<16x128xf32>
    %148 = vector.extract_strided_slice %89 {offsets = [0, 0], sizes = [16, 128], strides = [1, 1]} : vector<16x256xf32> to vector<16x128xf32>
    %149 = arith.addf %147, %148 : vector<16x128xf32>
    %150 = arith.truncf %149 : vector<16x128xf32> to vector<16x128xbf16>
    %151 = vector.broadcast %145 : f32 to vector<16x128xf32>
    %152 = arith.mulf %151, %19 : vector<16x128xf32>
    %153 = vector.extract_strided_slice %89 {offsets = [0, 128], sizes = [16, 128], strides = [1, 1]} : vector<16x256xf32> to vector<16x128xf32>
    %154 = arith.addf %152, %153 : vector<16x128xf32>
    %155 = arith.truncf %154 : vector<16x128xf32> to vector<16x128xbf16>
    %c0_65 = arith.constant 0 : index
    %c0_66 = arith.constant 0 : index
    %156 = vector.load %arg13[%c0_65, %c0_66] : memref<256x128xbf16, #tpu.memory_space<vmem>>, vector<256x128xbf16>
    %157 = vector.extract_strided_slice %156 {offsets = [0, 0], sizes = [128, 128], strides = [1, 1]} : vector<256x128xbf16> to vector<128x128xbf16>
    %cst_67 = arith.constant dense<0.000000e+00> : vector<16x128xf32>
    %158 = tpu.matmul %150, %157, %cst_67 {dimension_numbers = #tpu.dot_dimension_numbers<[1], [0], [0], [1], [0, 0, 1, 1], [], []>} : vector<16x128xbf16>, vector<128x128xbf16>, vector<16x128xf32> -> vector<16x128xf32>
    %159 = vector.extract_strided_slice %156 {offsets = [128, 0], sizes = [128, 128], strides = [1, 1]} : vector<256x128xbf16> to vector<128x128xbf16>
    %cst_68 = arith.constant dense<0.000000e+00> : vector<16x128xf32>
    %160 = tpu.matmul %155, %159, %cst_68 {dimension_numbers = #tpu.dot_dimension_numbers<[1], [0], [0], [1], [0, 0, 1, 1], [], []>} : vector<16x128xbf16>, vector<128x128xbf16>, vector<16x128xf32> -> vector<16x128xf32>
    %161 = arith.addf %158, %160 : vector<16x128xf32>
    %cst_69 = arith.constant dense<0.000000e+00> : vector<128xf32>
    %162 = vector.multi_reduction <add>, %161, %cst_69 [0] : vector<16x128xf32> to vector<128xf32>
    %163 = vector.shape_cast %162 : vector<128xf32> to vector<1x128xf32>
    %cst_70 = arith.constant 1.600000e+01 : f32
    %164 = vector.broadcast %cst_70 : f32 to vector<1x128xf32>
    %165 = arith.divf %163, %164 : vector<1x128xf32>
    %166 = vector.broadcast %165 : vector<1x128xf32> to vector<16x128xf32>
    %167 = arith.subf %161, %166 : vector<16x128xf32>
    %168 = arith.mulf %167, %167 : vector<16x128xf32>
    %cst_71 = arith.constant dense<0.000000e+00> : vector<128xf32>
    %169 = vector.multi_reduction <add>, %168, %cst_71 [0] : vector<16x128xf32> to vector<128xf32>
    %170 = vector.shape_cast %169 : vector<128xf32> to vector<1x128xf32>
    %cst_72 = arith.constant 1.600000e+01 : f32
    %171 = vector.broadcast %cst_72 : f32 to vector<1x128xf32>
    %172 = arith.divf %170, %171 : vector<1x128xf32>
    %c0_73 = arith.constant 0 : index
    %c0_74 = arith.constant 0 : index
    %173 = vector.load %arg14[%c0_73, %c0_74] : memref<1x128xf32, #tpu.memory_space<vmem>>, vector<1x128xf32>
    %cst_75 = arith.constant 9.99999974E-6 : f32
    %174 = vector.broadcast %cst_75 : f32 to vector<1x128xf32>
    %175 = arith.addf %172, %174 : vector<1x128xf32>
    %176 = math.rsqrt %175 : vector<1x128xf32>
    %177 = arith.mulf %173, %176 : vector<1x128xf32>
    %c0_76 = arith.constant 0 : index
    %c0_77 = arith.constant 0 : index
    %178 = vector.load %arg15[%c0_76, %c0_77] : memref<1x128xf32, #tpu.memory_space<vmem>>, vector<1x128xf32>
    %179 = arith.mulf %165, %177 : vector<1x128xf32>
    %180 = arith.subf %178, %179 : vector<1x128xf32>
    %181 = vector.broadcast %177 : vector<1x128xf32> to vector<16x128xf32>
    %182 = arith.mulf %161, %181 : vector<16x128xf32>
    %183 = vector.broadcast %180 : vector<1x128xf32> to vector<16x128xf32>
    %184 = arith.addf %182, %183 : vector<16x128xf32>
    %cst_78 = arith.constant 0.000000e+00 : f32
    %185 = vector.broadcast %cst_78 : f32 to vector<16x128xf32>
    %186 = arith.maximumf %184, %185 : vector<16x128xf32>
    %187 = arith.truncf %186 : vector<16x128xf32> to vector<16x128xbf16>
    %c0_79 = arith.constant 0 : index
    %c0_80 = arith.constant 0 : index
    %188 = vector.load %arg16[%c0_79, %c0_80] : memref<128x128xbf16, #tpu.memory_space<vmem>>, vector<128x128xbf16>
    %cst_81 = arith.constant dense<0.000000e+00> : vector<16x128xf32>
    %189 = tpu.matmul %187, %188, %cst_81 {dimension_numbers = #tpu.dot_dimension_numbers<[1], [0], [0], [1], [0, 0, 1, 1], [], []>} : vector<16x128xbf16>, vector<128x128xbf16>, vector<16x128xf32> -> vector<16x128xf32>
    %cst_82 = arith.constant dense<0.000000e+00> : vector<128xf32>
    %190 = vector.multi_reduction <add>, %189, %cst_82 [0] : vector<16x128xf32> to vector<128xf32>
    %191 = vector.shape_cast %190 : vector<128xf32> to vector<1x128xf32>
    %cst_83 = arith.constant 1.600000e+01 : f32
    %192 = vector.broadcast %cst_83 : f32 to vector<1x128xf32>
    %193 = arith.divf %191, %192 : vector<1x128xf32>
    %194 = vector.broadcast %193 : vector<1x128xf32> to vector<16x128xf32>
    %195 = arith.subf %189, %194 : vector<16x128xf32>
    %196 = arith.mulf %195, %195 : vector<16x128xf32>
    %cst_84 = arith.constant dense<0.000000e+00> : vector<128xf32>
    %197 = vector.multi_reduction <add>, %196, %cst_84 [0] : vector<16x128xf32> to vector<128xf32>
    %198 = vector.shape_cast %197 : vector<128xf32> to vector<1x128xf32>
    %cst_85 = arith.constant 1.600000e+01 : f32
    %199 = vector.broadcast %cst_85 : f32 to vector<1x128xf32>
    %200 = arith.divf %198, %199 : vector<1x128xf32>
    %c0_86 = arith.constant 0 : index
    %c0_87 = arith.constant 0 : index
    %201 = vector.load %arg17[%c0_86, %c0_87] : memref<1x128xf32, #tpu.memory_space<vmem>>, vector<1x128xf32>
    %cst_88 = arith.constant 9.99999974E-6 : f32
    %202 = vector.broadcast %cst_88 : f32 to vector<1x128xf32>
    %203 = arith.addf %200, %202 : vector<1x128xf32>
    %204 = math.rsqrt %203 : vector<1x128xf32>
    %205 = arith.mulf %201, %204 : vector<1x128xf32>
    %c0_89 = arith.constant 0 : index
    %c0_90 = arith.constant 0 : index
    %206 = vector.load %arg18[%c0_89, %c0_90] : memref<1x128xf32, #tpu.memory_space<vmem>>, vector<1x128xf32>
    %207 = arith.mulf %193, %205 : vector<1x128xf32>
    %208 = arith.subf %206, %207 : vector<1x128xf32>
    %209 = vector.broadcast %205 : vector<1x128xf32> to vector<16x128xf32>
    %210 = arith.mulf %189, %209 : vector<16x128xf32>
    %211 = vector.broadcast %208 : vector<1x128xf32> to vector<16x128xf32>
    %212 = arith.addf %210, %211 : vector<16x128xf32>
    %cst_91 = arith.constant 0.000000e+00 : f32
    %213 = vector.broadcast %cst_91 : f32 to vector<16x128xf32>
    %214 = arith.maximumf %212, %213 : vector<16x128xf32>
    %215 = arith.truncf %214 : vector<16x128xf32> to vector<16x128xbf16>
    %c0_92 = arith.constant 0 : index
    %c0_93 = arith.constant 0 : index
    %216 = vector.load %arg31[%c0_92, %c0_93] : memref<16x128xbf16, #tpu.memory_space<vmem>>, vector<16x128xbf16>
    tpu.vector_store %arg31[%c0_92, %c0_93], %215 {strides = array<i32>} : memref<16x128xbf16, #tpu.memory_space<vmem>>, vector<16x128xbf16>,
    %c0_94 = arith.constant 0 : index
    %c0_95 = arith.constant 0 : index
    %217 = vector.load %arg5[%c0_94, %c0_95] : memref<128x16xbf16, #tpu.memory_space<vmem>>, vector<128x16xbf16>
    %cst_96 = arith.constant dense<0.000000e+00> : vector<128x128xf32>
    %218 = tpu.matmul %217, %143, %cst_96 {dimension_numbers = #tpu.dot_dimension_numbers<[1], [0], [0], [1], [0, 0, 1, 1], [], []>} : vector<128x16xbf16>, vector<16x128xbf16>, vector<128x128xf32> -> vector<128x128xf32>
    %219 = vector.extract_strided_slice %218 {offsets = [0, 0], sizes = [32, 128], strides = [1, 1]} : vector<128x128xf32> to vector<32x128xf32>
    %220 = vector.extract_strided_slice %218 {offsets = [32, 0], sizes = [32, 128], strides = [1, 1]} : vector<128x128xf32> to vector<32x128xf32>
    %221 = vector.extract_strided_slice %218 {offsets = [64, 0], sizes = [32, 128], strides = [1, 1]} : vector<128x128xf32> to vector<32x128xf32>
    %222 = vector.extract_strided_slice %218 {offsets = [96, 0], sizes = [32, 128], strides = [1, 1]} : vector<128x128xf32> to vector<32x128xf32>
    %c1 = arith.constant 1 : index
    %223 = memref.load %arg0[%c1] : memref<3xf32, #tpu.memory_space<smem>>
    %cst_97 = arith.constant 1.000000e+00 : f32
    %224 = arith.addf %cst_97, %223 : f32
    %c2 = arith.constant 2 : index
    %225 = memref.load %arg0[%c2] : memref<3xf32, #tpu.memory_space<smem>>
    %cst_98 = arith.constant 1.000000e+00 : f32
    %226 = arith.addf %cst_98, %225 : f32
    %227 = vector.broadcast %224 : f32 to vector<32x128xf32>
    %228 = arith.mulf %227, %14 : vector<32x128xf32>
    %229 = vector.broadcast %226 : f32 to vector<32x128xf32>
    %230 = arith.mulf %229, %219 : vector<32x128xf32>
    %231 = arith.addf %228, %230 : vector<32x128xf32>
    %232 = arith.addf %231, %221 : vector<32x128xf32>
    %233 = arith.truncf %232 : vector<32x128xf32> to vector<32x128xbf16>
    %234 = vector.broadcast %224 : f32 to vector<32x128xf32>
    %235 = arith.mulf %234, %15 : vector<32x128xf32>
    %236 = vector.broadcast %226 : f32 to vector<32x128xf32>
    %237 = arith.mulf %236, %220 : vector<32x128xf32>
    %238 = arith.addf %235, %237 : vector<32x128xf32>
    %239 = arith.addf %238, %222 : vector<32x128xf32>
    %240 = arith.truncf %239 : vector<32x128xf32> to vector<32x128xbf16>
    %c0_99 = arith.constant 0 : index
    %c0_100 = arith.constant 0 : index
    %241 = vector.load %arg24[%c0_99, %c0_100] : memref<256x128xbf16, #tpu.memory_space<vmem>>, vector<256x128xbf16>
    %242 = vector.extract_strided_slice %241 {offsets = [0, 0], sizes = [128, 128], strides = [1, 1]} : vector<256x128xbf16> to vector<128x128xbf16>
    %cst_101 = arith.constant dense<0.000000e+00> : vector<32x128xf32>
    %243 = tpu.matmul %233, %242, %cst_101 {dimension_numbers = #tpu.dot_dimension_numbers<[1], [0], [0], [1], [0, 0, 1, 1], [], []>} : vector<32x128xbf16>, vector<128x128xbf16>, vector<32x128xf32> -> vector<32x128xf32>
    %244 = vector.extract_strided_slice %241 {offsets = [128, 0], sizes = [128, 128], strides = [1, 1]} : vector<256x128xbf16> to vector<128x128xbf16>
    %cst_102 = arith.constant dense<0.000000e+00> : vector<32x128xf32>
    %245 = tpu.matmul %240, %244, %cst_102 {dimension_numbers = #tpu.dot_dimension_numbers<[1], [0], [0], [1], [0, 0, 1, 1], [], []>} : vector<32x128xbf16>, vector<128x128xbf16>, vector<32x128xf32> -> vector<32x128xf32>
    %246 = arith.addf %243, %245 : vector<32x128xf32>
    %cst_103 = arith.constant dense<0.000000e+00> : vector<128xf32>
    %247 = vector.multi_reduction <add>, %246, %cst_103 [0] : vector<32x128xf32> to vector<128xf32>
    %248 = vector.shape_cast %247 : vector<128xf32> to vector<1x128xf32>
    %cst_104 = arith.constant 3.200000e+01 : f32
    %249 = vector.broadcast %cst_104 : f32 to vector<1x128xf32>
    %250 = arith.divf %248, %249 : vector<1x128xf32>
    %251 = vector.broadcast %250 : vector<1x128xf32> to vector<32x128xf32>
    %252 = arith.subf %246, %251 : vector<32x128xf32>
    %253 = arith.mulf %252, %252 : vector<32x128xf32>
    %cst_105 = arith.constant dense<0.000000e+00> : vector<128xf32>
    %254 = vector.multi_reduction <add>, %253, %cst_105 [0] : vector<32x128xf32> to vector<128xf32>
    %255 = vector.shape_cast %254 : vector<128xf32> to vector<1x128xf32>
    %cst_106 = arith.constant 3.200000e+01 : f32
    %256 = vector.broadcast %cst_106 : f32 to vector<1x128xf32>
    %257 = arith.divf %255, %256 : vector<1x128xf32>
    %c0_107 = arith.constant 0 : index
    %c0_108 = arith.constant 0 : index
    %258 = vector.load %arg25[%c0_107, %c0_108] : memref<1x128xf32, #tpu.memory_space<vmem>>, vector<1x128xf32>
    %cst_109 = arith.constant 9.99999974E-6 : f32
    %259 = vector.broadcast %cst_109 : f32 to vector<1x128xf32>
    %260 = arith.addf %257, %259 : vector<1x128xf32>
    %261 = math.rsqrt %260 : vector<1x128xf32>
    %262 = arith.mulf %258, %261 : vector<1x128xf32>
    %c0_110 = arith.constant 0 : index
    %c0_111 = arith.constant 0 : index
    %263 = vector.load %arg26[%c0_110, %c0_111] : memref<1x128xf32, #tpu.memory_space<vmem>>, vector<1x128xf32>
    %264 = arith.mulf %250, %262 : vector<1x128xf32>
    %265 = arith.subf %263, %264 : vector<1x128xf32>
    %266 = vector.broadcast %262 : vector<1x128xf32> to vector<32x128xf32>
    %267 = arith.mulf %246, %266 : vector<32x128xf32>
    %268 = vector.broadcast %265 : vector<1x128xf32> to vector<32x128xf32>
    %269 = arith.addf %267, %268 : vector<32x128xf32>
    %cst_112 = arith.constant 0.000000e+00 : f32
    %270 = vector.broadcast %cst_112 : f32 to vector<32x128xf32>
    %271 = arith.maximumf %269, %270 : vector<32x128xf32>
    %272 = arith.truncf %271 : vector<32x128xf32> to vector<32x128xbf16>
    %c0_113 = arith.constant 0 : index
    %c0_114 = arith.constant 0 : index
    %273 = vector.load %arg27[%c0_113, %c0_114] : memref<128x128xbf16, #tpu.memory_space<vmem>>, vector<128x128xbf16>
    %cst_115 = arith.constant dense<0.000000e+00> : vector<32x128xf32>
    %274 = tpu.matmul %272, %273, %cst_115 {dimension_numbers = #tpu.dot_dimension_numbers<[1], [0], [0], [1], [0, 0, 1, 1], [], []>} : vector<32x128xbf16>, vector<128x128xbf16>, vector<32x128xf32> -> vector<32x128xf32>
    %cst_116 = arith.constant dense<0.000000e+00> : vector<128xf32>
    %275 = vector.multi_reduction <add>, %274, %cst_116 [0] : vector<32x128xf32> to vector<128xf32>
    %276 = vector.shape_cast %275 : vector<128xf32> to vector<1x128xf32>
    %cst_117 = arith.constant 3.200000e+01 : f32
    %277 = vector.broadcast %cst_117 : f32 to vector<1x128xf32>
    %278 = arith.divf %276, %277 : vector<1x128xf32>
    %279 = vector.broadcast %278 : vector<1x128xf32> to vector<32x128xf32>
    %280 = arith.subf %274, %279 : vector<32x128xf32>
    %281 = arith.mulf %280, %280 : vector<32x128xf32>
    %cst_118 = arith.constant dense<0.000000e+00> : vector<128xf32>
    %282 = vector.multi_reduction <add>, %281, %cst_118 [0] : vector<32x128xf32> to vector<128xf32>
    %283 = vector.shape_cast %282 : vector<128xf32> to vector<1x128xf32>
    %cst_119 = arith.constant 3.200000e+01 : f32
    %284 = vector.broadcast %cst_119 : f32 to vector<1x128xf32>
    %285 = arith.divf %283, %284 : vector<1x128xf32>
    %c0_120 = arith.constant 0 : index
    %c0_121 = arith.constant 0 : index
    %286 = vector.load %arg28[%c0_120, %c0_121] : memref<1x128xf32, #tpu.memory_space<vmem>>, vector<1x128xf32>
    %cst_122 = arith.constant 9.99999974E-6 : f32
    %287 = vector.broadcast %cst_122 : f32 to vector<1x128xf32>
    %288 = arith.addf %285, %287 : vector<1x128xf32>
    %289 = math.rsqrt %288 : vector<1x128xf32>
    %290 = arith.mulf %286, %289 : vector<1x128xf32>
    %c0_123 = arith.constant 0 : index
    %c0_124 = arith.constant 0 : index
    %291 = vector.load %arg29[%c0_123, %c0_124] : memref<1x128xf32, #tpu.memory_space<vmem>>, vector<1x128xf32>
    %292 = arith.mulf %278, %290 : vector<1x128xf32>
    %293 = arith.subf %291, %292 : vector<1x128xf32>
    %294 = vector.broadcast %290 : vector<1x128xf32> to vector<32x128xf32>
    %295 = arith.mulf %274, %294 : vector<32x128xf32>
    %296 = vector.broadcast %293 : vector<1x128xf32> to vector<32x128xf32>
    %297 = arith.addf %295, %296 : vector<32x128xf32>
    %cst_125 = arith.constant 0.000000e+00 : f32
    %298 = vector.broadcast %cst_125 : f32 to vector<32x128xf32>
    %299 = arith.maximumf %297, %298 : vector<32x128xf32>
    %300 = arith.truncf %299 : vector<32x128xf32> to vector<32x128xbf16>
    %c0_126 = arith.constant 0 : index
    %c0_127 = arith.constant 0 : index
    %301 = vector.load %arg30[%c0_126, %c0_127] : memref<32x128xbf16, #tpu.memory_space<vmem>>, vector<32x128xbf16>
    tpu.vector_store %arg30[%c0_126, %c0_127], %300 {strides = array<i32>} : memref<32x128xbf16, #tpu.memory_space<vmem>>, vector<32x128xbf16>,
    return
  }
}

</mosaic_0001>

<bundles_post_ra>
// kernel: edge_cycle_forward.1
= control target key start
LH: loop header
LB: loop body
LE: loop exit
PB: predicated region body
PF: predicated region fallthrough
CT: control target
= control target key end

     0   :  { %s3625_s6 = smov 1   ;;  %s3626_s10 = smov 2   ;;  %s4263_s0 = inlined_call_operand.smem [shape: u32[32], index: -1, kind: input, shape index: {}] }
   0x1   :  { %s3673_s5 = sld [smem:[%s4263_s0]]   ;;  %s3627_s14 = smov 3  }
   0x2   :  { %s3678_s9 = sld [smem:[%s4263_s0 + %s3625_s6]]   ;;  %s3628_s18 = smov 4  }
   0x3   :  { %s3683_s13 = sld [smem:[%s4263_s0 + %s3626_s10]]   ;;  %s3629_s22 = smov 5  }
   0x4   :  { %s3688_s17 = sld [smem:[%s4263_s0 + %s3627_s14]]   ;;  %s3630_s26 = smov 6  }
   0x5   :  { %s3693_s21 = sld [smem:[%s4263_s0 + %s3628_s18]]   ;;  %s3631_s30 = smov 7  }
   0x6   :  { %s3698_s25 = sld [smem:[%s4263_s0 + %s3629_s22]]   ;;  %s3632_s4 = smov 8  }
   0x7   :  { %s3703_s29 = sld [smem:[%s4263_s0 + %s3630_s26]]   ;;  %s3633_s10 = smov 9  }
   0x8   :  { %s3708_s3 = sld [smem:[%s4263_s0 + %s3631_s30]]   ;;  %s3634_s15 = smov 10  }
   0x9   :  { %s3713_s8 = sld [smem:[%s4263_s0 + %s3632_s4]]   ;;  %s3635_s20 = smov 11  }
   0xa   :  { %s3718_s14 = sld [smem:[%s4263_s0 + %s3633_s10]]   ;;  %s3636_s26 = smov 12  }
   0xb   :  { %s3723_s19 = sld [smem:[%s4263_s0 + %s3634_s15]]   ;;  %s3637_s1 = smov 13  }
   0xc   :  { %4268 = sst [smem:[#allocation11_spill]] %s3698_s25  ;;  %s3638_s7 = smov 14  }
   0xd   :  { %s3728_s24 = sld [smem:[%s4263_s0 + %s3635_s20]]   ;;  %s3639_s15 = smov 15  }
   0xe   :  { %s3733_s30 = sld [smem:[%s4263_s0 + %s3636_s26]]   ;;  %s3640_s22 = smov 16  }
   0xf   :  { %s3738_s6 = sld [smem:[%s4263_s0 + %s3637_s1]]   ;;  %s3641_s28 = smov 17  }
  0x10   :  { %s3743_s12 = sld [smem:[%s4263_s0 + %s3638_s7]]   ;;  %s3642_s7 = smov 18  }
  0x11   :  { %s3748_s20 = sld [smem:[%s4263_s0 + %s3639_s15]]   ;;  %s3643_s15 = smov 19  }
  0x12   :  { %s3753_s27 = sld [smem:[%s4263_s0 + %s3640_s22]]   ;;  %s3644_s22 = smov 20  }
  0x13   :  { %4269 = sst [smem:[#allocation12_spill]] %s3728_s24 }
  0x14   :  { %4270 = sst [smem:[#allocation13_spill]] %s3733_s30 }
  0x15   :  { %s3758_s4 = sld [smem:[%s4263_s0 + %s3641_s28]]   ;;  %s3645_s28 = smov 21  }
  0x16   :  { %4271 = sst [smem:[#allocation14_spill]] %s3743_s12 }
  0x17   :  { %4272 = sst [smem:[#allocation15_spill]] %s3748_s20 }
  0x18   :  { %4273 = sst [smem:[#allocation16_spill]] %s3753_s27 }
  0x19   :  { %s3763_s25 = sld [smem:[%s4263_s0 + %s3642_s7]]   ;;  %s3646_s7 = smov 22  }
  0x1a   :  { %s3768_s20 = sld [smem:[%s4263_s0 + %s3643_s15]]   ;;  %s3647_s15 = smov 23  }
  0x1b   :  { %4274 = sst [smem:[#allocation17_spill]] %s3758_s4 }
  0x1c   :  { %s3773_s12 = sld [smem:[%s4263_s0 + %s3644_s22]]   ;;  %s3648_s22 = smov 24  }
  0x1d   :  { %s3778_s4 = sld [smem:[%s4263_s0 + %s3645_s28]]   ;;  %s3649_s28 = smov 25  }
  0x1e   :  { %s3788_s30 = sld [smem:[%s4263_s0 + %s3647_s15]]   ;;  %s3651_s15 = smov 27  }
  0x1f   :  { %4275 = sst [smem:[#allocation18_spill]] %s3763_s25 }
  0x20   :  { %s3783_s25 = sld [smem:[%s4263_s0 + %s3646_s7]]   ;;  %s3650_s7 = smov 26  }
  0x21   :  { %s3793_s24 = sld [smem:[%s4263_s0 + %s3648_s22]]   ;;  %s3652_s22 = smov 28  }
  0x22   :  { %s3798_s27 = sld [smem:[%s4263_s0 + %s3649_s28]]   ;;  %s3653_s28 = smov 29  }
  0x24   :  { %4277 = sst [smem:[#allocation20_spill]] %s3788_s30 }
  0x25   :  { %s3808_s30 = sld [smem:[%s4263_s0 + %s3651_s15]]   ;;  %s3655_s15 = smov 31  }
  0x26   :  { %4276 = sst [smem:[#allocation19_spill]] %s3783_s25 }
  0x27   :  { %4278 = sst [smem:[#allocation21_spill]] %s3793_s24 }
  0x28   :  { %4279 = sst [smem:[#allocation22_spill]] %s3798_s27 }
  0x29   :  { %s3803_s25 = sld [smem:[%s4263_s0 + %s3650_s7]]   ;;  %s3654_s7 = smov 30  }
  0x2a   :  { %s3813_s24 = sld [smem:[%s4263_s0 + %s3652_s22]]  }
  0x2b   :  { %4281 = sst [smem:[#allocation24_spill]] %s3808_s30 }
  0x2c   :  { %s3818_s27 = sld [smem:[%s4263_s0 + %s3653_s28]]  }
  0x2d   :  { %s3828_s30 = sld [smem:[%s4263_s0 + %s3655_s15]]  }
  0x2f   :  { %4280 = sst [smem:[#allocation23_spill]] %s3803_s25 }
  0x30   :  { %s3823_s25 = sld [smem:[%s4263_s0 + %s3654_s7]]  }
  0x31   :  { %69 = vsyncpa [#allocation4], 0 }
  0x32   :  { %70 = vsyncpa [#allocation3], 0 }
  0x33   :  { %71 = vsyncpa [#allocation7], 0  ;;  %s78_s22 = sshll.u32 %s3673_s5, 4  ;;  %s79_s22 = int_to_ptr.vmem [resolvable:$true] %s78_s22 }
  0x34   :  { %s3563_s23 = scalar_lea.vmem %s79_s22, 16  ;;  %p3568_p1 = scmp.lt.s32.totalorder %s79_s22, %s79_s22 }
  0x35   :  { %p3564_p0 = scmp.ne.s32.totalorder %s79_s22, %s3563_s23  ;;  %p3569_p2 = scmp.lt.s32.totalorder %s3563_s23, %s3563_s23 }
  0x37   :  { %p3570_p3 = por %p3569_p2, %p3568_p1 }
  0x39   :  { %p3571_p4 = pnand %p3570_p3, %p3564_p0 }
  0x3b   :  { %3574 = shalt.err (!%p3571_p4)
}
  0x3c   :  { %s3656_s26 = smov [#allocation2]  }
  0x3d   :  { %81 = dma.vmem_to_smem %s79_s22, 16, %s3656_s26, [#allocation4]  }
  0x3e   :  { %3619 = dma.done.wait [#allocation4], 16  }
  0x3f   :  { %3620 = vsyncadd [#allocation4], 4294967280 }
  0x40   :  { %143 = sfence }
  0x41   :  { %v145_v0 = vld [vmem:[%s3678_s9] sm:$0xff]  ;;  %v146_v1 = vld [vmem:[%s3678_s9 + $0x8] sm:$0xff]  ;;  %v147_v2 = vld [vmem:[%s3678_s9 + $0x10] sm:$0xff]  ;;  %vm210_vm0 = vcmask 261120   ;;  %vm350_vm1 = vcmask 130048   ;;  %v3657_v32 = vmov 0  }
  0x42   :  { %v149_v3 = vpack.c.bf16 %v146_v1, %v145_v0  ;;  %v148_v4 = vld [vmem:[%s3678_s9 + $0x18] sm:$0xff]  ;;  %v3343_v6 = vld [vmem:[%s3688_s17] sm:$0xff]   ;;  %v3344_v7 = vld [vmem:[%s3688_s17 + $0x8] sm:$0xff]   ;;  %v3658_v34 = vmov 0.0   ;;  %vm3659_vm2 = vmmov 0   ;;  %s4282_s0 = sld [smem:[#allocation16_spill]] }
  0x43   :  { %v150_v5 = vpack.c.bf16 %v148_v4, %v147_v2  ;;  %3083 = vmatprep.mubr.msk.bf16.mxu0 %vm210_vm0, %v3343_v6  ;;  %v151_v8 = vld [vmem:[%s3683_s13] sm:$0xff]  ;;  %v152_v9 = vld [vmem:[%s3683_s13 + $0x8] sm:$0xff]  ;;  %v3345_v10 = vld [vmem:[%s3688_s17 + $0x10] sm:$0xff]   ;;  %s4283_s5 = sld [smem:[#allocation12_spill]]  ;;  %s4284_s9 = sld [smem:[#allocation13_spill]] }
  0x44   :  { %3079 = vmatprep.subr.bf16.mxu0 %v149_v3  ;;  %v3841_v11 = vpack.c.bf16 %v152_v9, %v151_v8  ;;  %v3347_v12 = vld [vmem:[%s3693_s21] sm:$0xff]   ;;  %v3348_v13 = vld [vmem:[%s3693_s21 + $0x8] sm:$0xff]   ;;  %v3354_v16 = vld [vmem:[%s3703_s29 + $0x94] ss:$8 sps:$4 sm:$0xff]   ;;  %s1580_s13 = sld [smem:[#allocation2]]  ;;  %s4285_s21 = sld [smem:[#allocation19_spill]] }
  0x45   :  { %3080 = vmatpush3.bf16.msra.mxu0 %v149_v3  ;;  %v3349_v14 = vld [vmem:[%s3703_s29 + $0x80] ss:$8 sps:$4 sm:$0xff]   ;;  %3101 = vmatprep.mubr.msk.bf16.mxu1 %vm350_vm1, %v3347_v12  ;;  %v3351_v15 = vld [vmem:[%s3703_s29 + $0x84] ss:$8 sps:$4 sm:$0xff]   ;;  %v3352_v17 = vld [vmem:[%s3703_s29 + $0x90] ss:$8 sps:$4 sm:$0xff]  }
  0x46   :  { %3081 = vmatprep.subr.bf16.mxu0 %v150_v5  ;;  %3099 = vmatprep.subr.bf16.mxu1 %v3841_v11  ;;  %v3357_v18 = vld [vmem:[%s3703_s29 + $0xa4] ss:$8 sps:$4 sm:$0xff]   ;;  %v3346_v19 = vld [vmem:[%s3688_s17 + $0x18] sm:$0xff]   ;;  %v3355_v20 = vld [vmem:[%s3703_s29 + $0xa0] ss:$8 sps:$4 sm:$0xff]   ;;  %s4291_s28 = sld [smem:[#allocation17_spill]] }
  0x47   :  { %3100 = vmatpush3.bf16.msra.mxu1 %v3841_v11  ;;  %v3360_v21 = vld [vmem:[%s3703_s29 + $0xb4] ss:$8 sps:$4 sm:$0xff]   ;;  %v3358_v22 = vld [vmem:[%s3703_s29 + $0xb0] ss:$8 sps:$4 sm:$0xff]   ;;  %v3363_v23 = vld [vmem:[%s3703_s29 + $0xc4] ss:$8 sps:$4 sm:$0xff]  }
  0x48   :  { %550 = vmatprep.subr.bf16.mxu1 %v3351_v15  ;;  %v3361_v24 = vld [vmem:[%s3703_s29 + $0xc0] ss:$8 sps:$4 sm:$0xff]   ;;  %v3366_v25 = vld [vmem:[%s3703_s29 + $0xd4] ss:$8 sps:$4 sm:$0xff]   ;;  %v3364_v26 = vld [vmem:[%s3703_s29 + $0xd0] ss:$8 sps:$4 sm:$0xff]  }
  0x49   :  { %3082 = vmatpush3.bf16.msra.mxu0 %v150_v5  ;;  %v3369_v27 = vld [vmem:[%s3703_s29 + $0xe4] ss:$8 sps:$4 sm:$0xff]   ;;  %v3367_v28 = vld [vmem:[%s3703_s29 + $0xe0] ss:$8 sps:$4 sm:$0xff]   ;;  %v3372_v29 = vld [vmem:[%s3703_s29 + $0xf4] ss:$8 sps:$4 sm:$0xff]  }
  0x4a   :  { %3102 = vmatmul.mubr.msk.bf16.vlgmr.msra.gmra.mrb[0].mxu1 %vm350_vm1, %v3348_v13  ;;  %v3370_v30 = vld [vmem:[%s3703_s29 + $0xf0] ss:$8 sps:$4 sm:$0xff]   ;;  %v3375_v31 = vld [vmem:[%s3703_s29 + $0x4] ss:$8 sps:$4 sm:$0xff]   ;;  %3105 = vmatprep.subr.bf16.mxu0 %v3658_v34  ;;  %v3373_v50 = vld [vmem:[%s3703_s29] ss:$8 sps:$4 sm:$0xff]  }
  0x4b   :  { %551 = vmatpush1.bf16.msra.mxu1 %v3349_v14  ;;  %582 = vmatprep.mubr.bf16.mxu1 %v3657_v32  ;;  %v3424_v33 = vld [vmem:[%s3708_s3] sm:$0xff]   ;;  %v3428_v35 = vld [vmem:[%s3708_s3 + $0x8] sm:$0xff]   ;;  %v3432_v36 = vld [vmem:[%s3708_s3 + $0x10] sm:$0xff]   ;;  %s4292_s1 = sld [smem:[#allocation18_spill]]  ;;  %s4293_s2 = sld [smem:[#allocation24_spill]] }
  0x4c   :  { %3084 = vmatmul.mubr.msk.bf16.vlgmr.msra.gmra.mrb[0].mxu0 %vm210_vm0, %v3344_v7  ;;  %552 = vmatprep.subr.bf16.mxu1 %v3354_v16  ;;  %v3436_v37 = vld [vmem:[%s3708_s3 + $0x18] sm:$0xff]   ;;  %v3437_v38 = vld [vmem:[%s3688_s17 + $0x20] sm:$0xff]   ;;  %v3441_v39 = vld [vmem:[%s3688_s17 + $0x28] sm:$0xff]   ;;  %s4294_s7 = sld [smem:[#allocation22_spill]]  ;;  %s4295_s10 = sld [smem:[#allocation23_spill]] }
  0x4d   :  { %3087 = vmatprep.mubr.msk.bf16.mxu0 %vm210_vm0, %v3345_v10  ;;  %3106 = vmatpush3.bf16.msra.mxu0 %v3424_v33  ;;  %v3442_v40 = vld [vmem:[%s3708_s3 + $0x20] sm:$0xff]   ;;  %v3446_v41 = vld [vmem:[%s3708_s3 + $0x28] sm:$0xff]   ;;  %v3447_v42 = vld [vmem:[%s3688_s17 + $0x30] sm:$0xff]   ;;  %s3661_s11 = smov [#allocation6]  }
  0x4e   :  { %3107 = vmatprep.subr.bf16.mxu0 %v3658_v34  ;;  %v3451_v43 = vld [vmem:[%s3688_s17 + $0x38] sm:$0xff]   ;;  %v3452_v44 = vld [vmem:[%s3708_s3 + $0x30] sm:$0xff]   ;;  %v3381_v59 = vld [vmem:[%s3703_s29 + $0x24] ss:$8 sps:$4 sm:$0xff]   ;;  %s1581_s17 = sadd.f32 1.0, %s1580_s13  ;;  %s2725_s15 = sshll.u32 %s3661_s11, 4  ;;  %s2726_s15 = int_to_ptr.vmem [resolvable:$true] %s2725_s15 }
  0x4f   :  { %553 = vmatpush1.bf16.msra.mxu1 %v3352_v17  ;;  %v3456_v45 = vld [vmem:[%s3708_s3 + $0x38] sm:$0xff]   ;;  %v3379_v62 = vld [vmem:[%s3703_s29 + $0x20] ss:$8 sps:$4 sm:$0xff]   ;;  %v3387_v5 = vld [vmem:[%s3703_s29 + $0x44] ss:$8 sps:$4 sm:$0xff]   ;;  %s4287_s3 = sld [smem:[#allocation14_spill]]  ;;  %p3580_p6 = scmp.lt.s32.totalorder %s2726_s15, %s2726_s15 }
  0x50   :  { %554 = vmatprep.subr.bf16.mxu1 %v3357_v18  ;;  %v3378_v54 = vld [vmem:[%s3703_s29 + $0x14] ss:$8 sps:$4 sm:$0xff]   ;;  %v3376_v58 = vld [vmem:[%s3703_s29 + $0x10] ss:$8 sps:$4 sm:$0xff]   ;;  %v3385_v6 = vld [vmem:[%s3703_s29 + $0x40] ss:$8 sps:$4 sm:$0xff]  }
  0x51   :  { %3108 = vmatpush3.bf16.msra.mxu0 %v3428_v35  ;;  %v3384_v0 = vld [vmem:[%s3703_s29 + $0x34] ss:$8 sps:$4 sm:$0xff]   ;;  %v3382_v4 = vld [vmem:[%s3703_s29 + $0x30] ss:$8 sps:$4 sm:$0xff]   ;;  %v3393_v9 = vld [vmem:[%s3703_s29 + $0x64] ss:$8 sps:$4 sm:$0xff]  }
  0x52   :  { %3109 = vmatprep.subr.bf16.mxu0 %v3658_v34  ;;  %v3390_v7 = vld [vmem:[%s3703_s29 + $0x54] ss:$8 sps:$4 sm:$0xff]   ;;  %v3388_v8 = vld [vmem:[%s3703_s29 + $0x50] ss:$8 sps:$4 sm:$0xff]   ;;  %v3391_v10 = vld [vmem:[%s3703_s29 + $0x60] ss:$8 sps:$4 sm:$0xff]  }
  0x53   :  { %555 = vmatpush1.bf16.msra.mxu1 %v3355_v20  ;;  %v3394_v12 = vld [vmem:[%s3703_s29 + $0x70] ss:$8 sps:$4 sm:$0xff]   ;;  %v3399_v13 = vld [vmem:[%s3703_s29 + $0x104] ss:$8 sps:$4 sm:$0xff]   ;;  %v3397_v14 = vld [vmem:[%s3703_s29 + $0x100] ss:$8 sps:$4 sm:$0xff]  }
  0x54   :  { %3088 = vmatmul.mubr.msk.bf16.gmra.mrb[4].mxu0 %vm210_vm0, %v3346_v19  ;;  %556 = vmatprep.subr.bf16.mxu1 %v3360_v21  ;;  %v3402_v15 = vld [vmem:[%s3703_s29 + $0x114] ss:$8 sps:$4 sm:$0xff]   ;;  %v3400_v16 = vld [vmem:[%s3703_s29 + $0x110] ss:$8 sps:$4 sm:$0xff]   ;;  %v3405_v17 = vld [vmem:[%s3703_s29 + $0x124] ss:$8 sps:$4 sm:$0xff]  }
  0x55   :  { %3110 = vmatpush3.bf16.msra.mxu0 %v3432_v36  ;;  %3091 = vmatprep.mubr.msk.bf16.mxu0 %vm210_vm0, %v3437_v38  ;;  %v3403_v18 = vld [vmem:[%s3703_s29 + $0x120] ss:$8 sps:$4 sm:$0xff]   ;;  %v3408_v19 = vld [vmem:[%s3703_s29 + $0x134] ss:$8 sps:$4 sm:$0xff]   ;;  %v3406_v20 = vld [vmem:[%s3703_s29 + $0x130] ss:$8 sps:$4 sm:$0xff]  }
  0x56   :  { %3111 = vmatprep.subr.bf16.mxu0 %v3658_v34  ;;  %v3411_v21 = vld [vmem:[%s3703_s29 + $0x144] ss:$8 sps:$4 sm:$0xff]   ;;  %v3425_v33 = vld [vmem:[%s3703_s29 + $0x190] ss:$8 sps:$4 sm:$0xff]   ;;  %v3429_v36 = vld [vmem:[%s3703_s29 + $0x1a0] ss:$8 sps:$4 sm:$0xff]  }
  0x57   :  { %557 = vmatpush1.bf16.msra.mxu1 %v3358_v22  ;;  %v3409_v22 = vld [vmem:[%s3703_s29 + $0x140] ss:$8 sps:$4 sm:$0xff]   ;;  %v3431_v35 = vld [vmem:[%s3703_s29 + $0x1a4] ss:$8 sps:$4 sm:$0xff]   ;;  %v3433_v38 = vld [vmem:[%s3703_s29 + $0x1b0] ss:$8 sps:$4 sm:$0xff]  }
  0x58   :  { %558 = vmatprep.subr.bf16.mxu1 %v3363_v23  ;;  %v3414_v23 = vld [vmem:[%s3703_s29 + $0x154] ss:$8 sps:$4 sm:$0xff]   ;;  %s3575_s16 = scalar_lea.vmem %s2726_s15, 128 }
  0x59   :  { %3112 = vmatpush3.bf16.msra.mxu0 %v3436_v37  ;;  %v3435_v37 = vld [vmem:[%s3703_s29 + $0x1b4] ss:$8 sps:$4 sm:$0xff]   ;;  %p3576_p5 = scmp.ne.s32.totalorder %s2726_s15, %s3575_s16  ;;  %p3581_p7 = scmp.lt.s32.totalorder %s3575_s16, %s3575_s16 }
  0x5a   :  { %3113 = vmatprep.subr.bf16.mxu0 %v3658_v34 }
  0x5b   :  { %559 = vmatpush1.bf16.msra.mxu1 %v3361_v24  ;;  %v3412_v24 = vld [vmem:[%s3703_s29 + $0x150] ss:$8 sps:$4 sm:$0xff]   ;;  %p3582_p8 = por %p3581_p7, %p3580_p6 }
  0x5c   :  { %560 = vmatprep.subr.bf16.mxu1 %v3366_v25  ;;  %3092 = vmatmul.mubr.msk.bf16.gmra.mrb[8].mxu0 %vm210_vm0, %v3441_v39  ;;  %v3417_v25 = vld [vmem:[%s3703_s29 + $0x164] ss:$8 sps:$4 sm:$0xff]  }
  0x5d   :  { %3114 = vmatpush3.bf16.msra.mxu0 %v3442_v40  ;;  %3095 = vmatprep.mubr.msk.bf16.mxu0 %vm210_vm0, %v3447_v42  ;;  %v3440_v39 = vld [vmem:[%s3703_s29 + $0x1c4] ss:$8 sps:$4 sm:$0xff]   ;;  %v3438_v40 = vld [vmem:[%s3703_s29 + $0x1c0] ss:$8 sps:$4 sm:$0xff]   ;;  %p3583_p9 = pnand %p3582_p8, %p3576_p5 }
  0x5e   :  { %3115 = vmatprep.subr.bf16.mxu0 %v3658_v34  ;;  %v3450_v42 = vld [vmem:[%s3703_s29 + $0x1e4] ss:$8 sps:$4 sm:$0xff]  }
  0x5f   :  { %561 = vmatpush1.bf16.msra.mxu1 %v3364_v26  ;;  %v3415_v26 = vld [vmem:[%s3703_s29 + $0x160] ss:$8 sps:$4 sm:$0xff]  }
  0x60   :  { %562 = vmatprep.subr.bf16.mxu1 %v3369_v27  ;;  %v3420_v27 = vld [vmem:[%s3703_s29 + $0x174] ss:$8 sps:$4 sm:$0xff]  }
  0x61   :  { %3116 = vmatpush3.bf16.msra.mxu0 %v3446_v41  ;;  %v3445_v41 = vld [vmem:[%s3703_s29 + $0x1d4] ss:$8 sps:$4 sm:$0xff]  }
  0x62   :  { %3117 = vmatprep.subr.bf16.mxu0 %v3658_v34 }
  0x63   :  { %563 = vmatpush1.bf16.msra.mxu1 %v3367_v28  ;;  %v3418_v28 = vld [vmem:[%s3703_s29 + $0x170] ss:$8 sps:$4 sm:$0xff]  }
  0x64   :  { %564 = vmatprep.subr.bf16.mxu1 %v3372_v29  ;;  %3096 = vmatmul.mubr.msk.bf16.gmra.mrb[12].mxu0 %vm210_vm0, %v3451_v43  ;;  %v3423_v29 = vld [vmem:[%s3703_s29 + $0x184] ss:$8 sps:$4 sm:$0xff]   ;;  %v3448_v43 = vld [vmem:[%s3703_s29 + $0x1e0] ss:$8 sps:$4 sm:$0xff]  }
  0x65   :  { %3118 = vmatpush3.bf16.msra.mxu0 %v3452_v44  ;;  %3121 = vmatprep.mubr.msk.bf16.mxu0 %vm3659_vm2, %v3658_v34  ;;  %v3455_v44 = vld [vmem:[%s3703_s29 + $0x1f4] ss:$8 sps:$4 sm:$0xff]  }
  0x66   :  { %3119 = vmatprep.subr.bf16.mxu0 %v3658_v34 }
  0x67   :  { %565 = vmatpush1.bf16.msra.mxu1 %v3370_v30  ;;  %v3421_v30 = vld [vmem:[%s3703_s29 + $0x180] ss:$8 sps:$4 sm:$0xff]  }
  0x68   :  { %673 = vmatprep.subr.bf16.mxu1 %v3375_v31  ;;  %v3427_v31 = vld [vmem:[%s3703_s29 + $0x194] ss:$8 sps:$4 sm:$0xff]  }
  0x69   :  { %3120 = vmatpush3.bf16.msra.mxu0 %v3456_v45  ;;  %v3453_v45 = vld [vmem:[%s3703_s29 + $0x1f0] ss:$8 sps:$4 sm:$0xff]  }
  0x6c   :  { %3122 = vmatmul.mubr.bf16.vlgmr.msra.gmra.mrb[16].mxu0 %v3841_v11  ;;  %v3396_v11 = vld [vmem:[%s3703_s29 + $0x74] ss:$8 sps:$4 sm:$0xff]  }
  0x6d   :  { %1252 = vmatprep.mubr.bf16.mxu0 %v3657_v32 }
 0x11d   :  { %v3899_v48 = vpop.f32.mrb[0].mxu1 }
 0x11e   :  { %v3902_v51 = vpop.f32.mrb[1].mxu1 }
 0x11f   :  { %v3085_v46 = vpop.f32.mrb[0].mxu0  ;;  %v3905_v55 = vpop.f32.mrb[2].mxu1 }
 0x120   :  { %v269_v47 = vpop.f32.mrb[1].mxu0  ;;  %v3907_v57 = vpop.f32.mrb[3].mxu1 }
 0x121   :  { %v3086_v49 = vpop.f32.mrb[2].mxu0 }
 0x122   :  { %v333_v52 = vpack.c.bf16 %v3086_v49, %v3085_v46  ;;  %v272_v53 = vpop.f32.mrb[3].mxu0 }
 0x123   :  { %v332_v56 = vpack.c.bf16 %v272_v53, %v269_v47 }
 0x124   :  { %583 = vmatmul.mubr.bf16.vlgmr.msra.gmra.mrb[4].mxu1 %v333_v52 }
 0x125   :  { %674 = vmatpush1.bf16.msra.mxu1 %v3373_v50  ;;  %705 = vmatprep.mubr.bf16.mxu1 %v3657_v32 }
 0x126   :  { %675 = vmatprep.subr.bf16.mxu1 %v3378_v54 }
 0x127   :  { %v3912_v60 = vpop.f32.mrb[4].mxu0 }
 0x128   :  { %v3914_v61 = vpop.f32.mrb[5].mxu0 }
 0x129   :  { %676 = vmatpush1.bf16.msra.mxu1 %v3376_v58  ;;  %v3917_v63 = vpop.f32.mrb[6].mxu0 }
 0x12a   :  { %677 = vmatprep.subr.bf16.mxu1 %v3381_v59  ;;  %v335_v1 = vpack.c.bf16 %v3917_v63, %v3912_v60  ;;  %v288_v2 = vpop.f32.mrb[7].mxu0  ;;  %v3457_v63 = vld [vmem:[%s3723_s19] ss:$8 sps:$4 sm:$0xff]  }
 0x12b   :  { %v334_v3 = vpack.c.bf16 %v288_v2, %v3914_v61  ;;  %v3465_v2 = vld [vmem:[%s3723_s19 + $0x24] ss:$8 sps:$4 sm:$0xff]  }
 0x12d   :  { %678 = vmatpush1.bf16.msra.mxu1 %v3379_v62  ;;  %v3459_v62 = vld [vmem:[%s3723_s19 + $0x4] ss:$8 sps:$4 sm:$0xff]  }
 0x12e   :  { %679 = vmatprep.subr.bf16.mxu1 %v3384_v0  ;;  %1220 = vmatprep.subr.bf16.mxu0 %v3459_v62  ;;  %v3462_v0 = vld [vmem:[%s3723_s19 + $0x14] ss:$8 sps:$4 sm:$0xff]  }
 0x12f   :  { %v3972_v46 = vpop.f32.mrb[8].mxu0  ;;  %1221 = vmatpush1.bf16.msra.mxu0 %v3457_v63 }
 0x130   :  { %v3974_v47 = vpop.f32.mrb[9].mxu0  ;;  %1222 = vmatprep.subr.bf16.mxu0 %v3462_v0 }
 0x131   :  { %680 = vmatpush1.bf16.msra.mxu1 %v3382_v4  ;;  %v3976_v49 = vpop.f32.mrb[10].mxu0  ;;  %v3468_v4 = vld [vmem:[%s3723_s19 + $0x34] ss:$8 sps:$4 sm:$0xff]  }
 0x132   :  { %681 = vmatprep.subr.bf16.mxu1 %v3387_v5  ;;  %v3978_v50 = vpop.f32.mrb[11].mxu0  ;;  %v3466_v5 = vld [vmem:[%s3723_s19 + $0x30] ss:$8 sps:$4 sm:$0xff]  }
 0x135   :  { %682 = vmatpush1.bf16.msra.mxu1 %v3385_v6  ;;  %v3471_v6 = vld [vmem:[%s3723_s19 + $0x44] ss:$8 sps:$4 sm:$0xff]  }
 0x136   :  { %683 = vmatprep.subr.bf16.mxu1 %v3390_v7  ;;  %v3469_v7 = vld [vmem:[%s3723_s19 + $0x40] ss:$8 sps:$4 sm:$0xff]  }
 0x137   :  { %v3980_v52 = vpop.f32.mrb[12].mxu0 }
 0x138   :  { %v3982_v53 = vpop.f32.mrb[13].mxu0 }
 0x139   :  { %684 = vmatpush1.bf16.msra.mxu1 %v3388_v8  ;;  %v3984_v54 = vpop.f32.mrb[14].mxu0  ;;  %v3474_v8 = vld [vmem:[%s3723_s19 + $0x54] ss:$8 sps:$4 sm:$0xff]  }
 0x13a   :  { %685 = vmatprep.subr.bf16.mxu1 %v3393_v9  ;;  %v3472_v9 = vld [vmem:[%s3723_s19 + $0x50] ss:$8 sps:$4 sm:$0xff]  }
 0x13d   :  { %686 = vmatpush1.bf16.msra.mxu1 %v3391_v10  ;;  %v3477_v10 = vld [vmem:[%s3723_s19 + $0x64] ss:$8 sps:$4 sm:$0xff]  }
 0x13e   :  { %687 = vmatprep.subr.bf16.mxu1 %v3396_v11  ;;  %v3475_v11 = vld [vmem:[%s3723_s19 + $0x60] ss:$8 sps:$4 sm:$0xff]  }
 0x141   :  { %688 = vmatpush1.bf16.msra.mxu1 %v3394_v12  ;;  %v3480_v12 = vld [vmem:[%s3723_s19 + $0x74] ss:$8 sps:$4 sm:$0xff]  }
 0x142   :  { %796 = vmatprep.subr.bf16.mxu1 %v3399_v13  ;;  %v3478_v13 = vld [vmem:[%s3723_s19 + $0x70] ss:$8 sps:$4 sm:$0xff]  }
 0x144   :  { %706 = vmatmul.mubr.bf16.vlgmr.msra.gmra.mrb[4].mxu1 %v332_v56  ;;  %v3986_v56 = vpop.f32.mrb[15].mxu0 }
 0x145   :  { %797 = vmatpush1.bf16.msra.mxu1 %v3397_v14  ;;  %828 = vmatprep.mubr.bf16.mxu1 %v3657_v32  ;;  %v1068_v58 = vpop.f32.mrb[16].mxu0 }
 0x146   :  { %798 = vmatprep.subr.bf16.mxu1 %v3402_v15  ;;  %v3123_v59 = vpop.f32.mrb[17].mxu0 }
 0x147   :  { %v1071_v60 = vpop.f32.mrb[18].mxu0 }
 0x148   :  { %v3124_v61 = vpop.f32.mrb[19].mxu0 }
 0x149   :  { %799 = vmatpush1.bf16.msra.mxu1 %v3400_v16 }
 0x14a   :  { %800 = vmatprep.subr.bf16.mxu1 %v3405_v17 }
 0x14d   :  { %801 = vmatpush1.bf16.msra.mxu1 %v3403_v18 }
 0x14e   :  { %802 = vmatprep.subr.bf16.mxu1 %v3408_v19 }
 0x151   :  { %803 = vmatpush1.bf16.msra.mxu1 %v3406_v20 }
 0x152   :  { %804 = vmatprep.subr.bf16.mxu1 %v3411_v21 }
 0x155   :  { %805 = vmatpush1.bf16.msra.mxu1 %v3409_v22 }
 0x156   :  { %806 = vmatprep.subr.bf16.mxu1 %v3414_v23 }
 0x159   :  { %807 = vmatpush1.bf16.msra.mxu1 %v3412_v24 }
 0x15a   :  { %808 = vmatprep.subr.bf16.mxu1 %v3417_v25 }
 0x15d   :  { %809 = vmatpush1.bf16.msra.mxu1 %v3415_v26 }
 0x15e   :  { %810 = vmatprep.subr.bf16.mxu1 %v3420_v27 }
 0x161   :  { %811 = vmatpush1.bf16.msra.mxu1 %v3418_v28 }
 0x162   :  { %923 = vmatprep.subr.bf16.mxu1 %v3423_v29 }
 0x164   :  { %829 = vmatmul.mubr.bf16.vlgmr.msra.gmra.mrb[4].mxu1 %v334_v3  ;;  %v3463_v3 = vld [vmem:[%s3723_s19 + $0x20] ss:$8 sps:$4 sm:$0xff]  }
 0x165   :  { %924 = vmatpush1.bf16.msra.mxu1 %v3421_v30  ;;  %955 = vmatprep.mubr.bf16.mxu1 %v3657_v32  ;;  %v3443_v32 = vld [vmem:[%s3703_s29 + $0x1d0] ss:$8 sps:$4 sm:$0xff]   ;;  %s4286_s29 = sld [smem:[#allocation20_spill]] }
 0x166   :  { %925 = vmatprep.subr.bf16.mxu1 %v3427_v31 }
 0x169   :  { %926 = vmatpush1.bf16.msra.mxu1 %v3425_v33 }
 0x16a   :  { %927 = vmatprep.subr.bf16.mxu1 %v3431_v35 }
 0x16d   :  { %928 = vmatpush1.bf16.msra.mxu1 %v3429_v36 }
 0x16e   :  { %929 = vmatprep.subr.bf16.mxu1 %v3435_v37 }
 0x171   :  { %930 = vmatpush1.bf16.msra.mxu1 %v3433_v38 }
 0x172   :  { %931 = vmatprep.subr.bf16.mxu1 %v3440_v39 }
 0x175   :  { %932 = vmatpush1.bf16.msra.mxu1 %v3438_v40 }
 0x176   :  { %933 = vmatprep.subr.bf16.mxu1 %v3445_v41 }
 0x179   :  { %934 = vmatpush1.bf16.msra.mxu1 %v3443_v32 }
 0x17a   :  { %935 = vmatprep.subr.bf16.mxu1 %v3450_v42 }
 0x17d   :  { %936 = vmatpush1.bf16.msra.mxu1 %v3448_v43 }
 0x17e   :  { %937 = vmatprep.subr.bf16.mxu1 %v3455_v44 }
 0x181   :  { %938 = vmatpush1.bf16.msra.mxu1 %v3453_v45 }
 0x182   :  { %3185 = vmatprep.subr.bf16.mxu1 %v3658_v34 }
 0x184   :  { %956 = vmatmul.mubr.bf16.vlgmr.msra.gmra.mrb[4].mxu1 %v335_v1  ;;  %v3460_v1 = vld [vmem:[%s3723_s19 + $0x10] ss:$8 sps:$4 sm:$0xff]   ;;  %s4290_s19 = sld [smem:[#allocation21_spill]] }
 0x185   :  { %3201 = vmatprep.mubr.msk.bf16.mxu1 %vm3659_vm2, %v3658_v34  ;;  %1223 = vmatpush1.bf16.msra.mxu0 %v3460_v1 }
 0x186   :  { %1224 = vmatprep.subr.bf16.mxu0 %v3465_v2 }
 0x189   :  { %1225 = vmatpush1.bf16.msra.mxu0 %v3463_v3 }
 0x18a   :  { %1226 = vmatprep.subr.bf16.mxu0 %v3468_v4 }
 0x18d   :  { %1227 = vmatpush1.bf16.msra.mxu0 %v3466_v5 }
 0x18e   :  { %1228 = vmatprep.subr.bf16.mxu0 %v3471_v6 }
 0x191   :  { %1229 = vmatpush1.bf16.msra.mxu0 %v3469_v7 }
 0x192   :  { %1230 = vmatprep.subr.bf16.mxu0 %v3474_v8 }
 0x195   :  { %1231 = vmatpush1.bf16.msra.mxu0 %v3472_v9 }
 0x196   :  { %1232 = vmatprep.subr.bf16.mxu0 %v3477_v10  ;;  %v1106_v10 = vlaneseq }
 0x199   :  { %1233 = vmatpush1.bf16.msra.mxu0 %v3475_v11 }
 0x19a   :  { %1234 = vmatprep.subr.bf16.mxu0 %v3480_v12  ;;  %v4017_v12 = vshrl.u32 %v1106_v10, 7  ;;  %v3498_v10 = vld [vmem:[%s4282_s0 + $0x10] sm:$0xff]  }
 0x19d   :  { %1235 = vmatpush1.bf16.msra.mxu0 %v3478_v13  ;;  %v1098_v13 = vld [vmem:[%s3713_s8] sm:$0x1]  ;;  %s4288_s8 = sld [smem:[#allocation15_spill]] }
 0x19e   :  { %3125 = vmatprep.subr.bf16.mxu0 %v3658_v34 }
 0x257   :  { %v4005_v14 = vpop.f32.mrb[4].mxu1 }
 0x258   :  { %v959_v15 = vpop.f32.mrb[5].mxu1 }
 0x259   :  { %v4007_v16 = vadd.f32 %v1068_v58, %v959_v15  ;;  %v961_v17 = vpop.f32.mrb[6].mxu1  ;;  %v4021_v15 = vsub.s32 0, %v4017_v12 }
 0x25a   :  { %v1077_v18 = vadd.f32 %v961_v17, %v4005_v14  ;;  %v963_v19 = vpop.f32.mrb[7].mxu1 }
 0x25b   :  { %v4010_v20 = vadd.f32 %v1071_v60, %v963_v19 }
 0x25c   :  { %v1078_v21 = vrot.slane %v1077_v18, 4 }
 0x25d   :  { %v1383_v22 = vadd.f32 %v4010_v20, %v4007_v16 }
 0x25e   :  { %v1079_v23 = vadd.f32 %v1078_v21, %v1077_v18  ;;  %v1403_v21 = vld [vmem:[%s3768_s20] sm:$0x1] }
 0x25f   :  { %v1384_v24 = vrot.slane %v1383_v22, 4 }
 0x260   :  { %v1080_v25 = vrot.slane %v1079_v23, 2 }
 0x261   :  { %v1385_v26 = vadd.f32 %v1384_v24, %v1383_v22  ;;  %v1102_v22 = vld [vmem:[%s3718_s14] sm:$0x1]  ;;  %s4289_s14 = sld [smem:[#allocation11_spill]] }
 0x262   :  { %v1081_v27 = vadd.f32 %v1080_v25, %v1079_v23 }
 0x263   :  { %v1386_v28 = vrot.slane %v1385_v26, 2 }
 0x264   :  { %v1082_v29 = vrot.slane %v1081_v27, 1 }
 0x265   :  { %v1387_v30 = vadd.f32 %v1386_v28, %v1385_v26 }
 0x266   :  { %v1083_v31 = vadd.f32 %v1082_v29, %v1081_v27 }
 0x267   :  { %v1388_v33 = vrot.slane %v1387_v30, 1 }
 0x268   :  { %v1085_v35 = vmul.f32 0.0625, %v1083_v31 }
 0x269   :  { %v1389_v36 = vadd.f32 %v1388_v33, %v1387_v30  ;;  %v1407_v30 = vld [vmem:[%s3773_s12] sm:$0x1]  ;;  %s2931_s12 = sld [smem:[#allocation2 + $0x2]] }
 0x26a   :  { %v1086_v37 = vsub.f32 %v4005_v14, %v1085_v35  ;;  %v1087_v38 = vsub.f32 %v961_v17, %v1085_v35 }
 0x26b   :  { %v1390_v39 = vmul.f32 0.0625, %v1389_v36 }
 0x26c   :  { %v1088_v40 = vmul.f32 %v1086_v37, %v1086_v37  ;;  %v1089_v41 = vmul.f32 %v1087_v38, %v1087_v38 }
 0x26d   :  { %v1391_v32 = vsub.f32 %v4007_v16, %v1390_v39  ;;  %v1392_v42 = vsub.f32 %v4010_v20, %v1390_v39 }
 0x26e   :  { %v1090_v43 = vadd.f32 %v1089_v41, %v1088_v40 }
 0x26f   :  { %v1393_v44 = vmul.f32 %v1391_v32, %v1391_v32  ;;  %v1394_v45 = vmul.f32 %v1392_v42, %v1392_v42 }
 0x270   :  { %v1091_v58 = vrot.slane %v1090_v43, 4 }
 0x271   :  { %v1395_v59 = vadd.f32 %v1394_v45, %v1393_v44 }
 0x272   :  { %v1092_v60 = vadd.f32 %v1091_v58, %v1090_v43 }
 0x273   :  { %v1396_v61 = vrot.slane %v1395_v59, 4 }
 0x274   :  { %v1093_v62 = vrot.slane %v1092_v60, 2 }
 0x275   :  { %v1397_v63 = vadd.f32 %v1396_v61, %v1395_v59  ;;  %v3483_v59 = vld [vmem:[%s3778_s4 + $0x10] sm:$0xff]   ;;  %v3485_v61 = vld [vmem:[%s3778_s4 + $0x20] sm:$0xff]  }
 0x276   :  { %v1094_v0 = vadd.f32 %v1093_v62, %v1092_v60  ;;  %v3484_v60 = vld [vmem:[%s3778_s4 + $0x18] sm:$0xff]   ;;  %v3486_v62 = vld [vmem:[%s3778_s4 + $0x28] sm:$0xff]  }
 0x277   :  { %v1398_v1 = vrot.slane %v1397_v63, 2 }
 0x278   :  { %v1095_v2 = vrot.slane %v1094_v0, 1 }
 0x279   :  { %v1399_v3 = vadd.f32 %v1398_v1, %v1397_v63  ;;  %v3487_v63 = vld [vmem:[%s3778_s4 + $0x30] sm:$0xff]   ;;  %v3489_v1 = vld [vmem:[%s3738_s6 + $0x40] sm:$0xff]  }
 0x27a   :  { %v1096_v4 = vadd.f32 %v1095_v2, %v1094_v0  ;;  %v3488_v0 = vld [vmem:[%s3778_s4 + $0x38] sm:$0xff]   ;;  %v3490_v2 = vld [vmem:[%s3738_s6 + $0x48] sm:$0xff]  }
 0x27b   :  { %v1400_v5 = vrot.slane %v1399_v3, 1 }
 0x27c   :  { %v1097_v6 = vmul.f32 0.0625, %v1096_v4  ;;  %v3492_v4 = vld [vmem:[%s3738_s6 + $0x58] sm:$0xff]  }
 0x27d   :  { %v1401_v7 = vadd.f32 %v1400_v5, %v1399_v3  ;;  %v3491_v3 = vld [vmem:[%s3738_s6 + $0x50] sm:$0xff]   ;;  %v3493_v5 = vld [vmem:[%s3738_s6 + $0x60] sm:$0xff]  }
 0x27e   :  { %v1099_v8 = vadd.f32 1e-05, %v1097_v6  ;;  %v3494_v6 = vld [vmem:[%s4282_s0] sm:$0xff]  }
 0x27f   :  { %v1402_v9 = vmul.f32 0.0625, %v1401_v7  ;;  %3186 = vmatpush3.bf16.msra.mxu1 %v3494_v6  ;;  %v3495_v7 = vld [vmem:[%s3738_s6 + $0x68] sm:$0xff]  }
 0x280   :  { %3545 = vrsqrt.f32 %v1099_v8  ;;  %3187 = vmatprep.subr.bf16.mxu1 %v3658_v34  ;;  %v3496_v8 = vld [vmem:[%s4282_s0 + $0x8] sm:$0xff]  }
 0x281   :  { %v1404_v11 = vadd.f32 1e-05, %v1402_v9  ;;  %v3497_v9 = vld [vmem:[%s3738_s6 + $0x70] sm:$0xff]  }
 0x283   :  { %3547 = vrsqrt.f32 %v1404_v11  ;;  %3188 = vmatpush3.bf16.msra.mxu1 %v3496_v8  ;;  %v3499_v11 = vld [vmem:[%s3738_s6 + $0x78] sm:$0xff]  }
 0x284   :  { %3189 = vmatprep.subr.bf16.mxu1 %v3658_v34 }
 0x287   :  { %3190 = vmatpush3.bf16.msra.mxu1 %v3498_v10 }
 0x288   :  { %3191 = vmatprep.subr.bf16.mxu1 %v3658_v34 }
 0x28a   :  { %v3546_v18 = vpop.eup %3545 }
 0x28b   :  { %v1101_v19 = vmul.f32 %v3546_v18, %v1098_v13  ;;  %v3500_v13 = vld [vmem:[%s4282_s0 + $0x18] sm:$0xff]   ;;  %v3502_v18 = vld [vmem:[%s4282_s0 + $0x20] sm:$0xff]  }
 0x28c   :  { %3192 = vmatpush3.bf16.msra.mxu1 %v3500_v13 }
 0x28d   :  { %v3548_v23 = vpop.eup %3547  ;;  %v1103_v24 = vmul.f32 %v1101_v19, %v1085_v35  ;;  %v1109_v25 = vrot.slane %v1101_v19, %v4021_v15  ;;  %3193 = vmatprep.subr.bf16.mxu1 %v3658_v34  ;;  %v3504_v19 = vld [vmem:[%s4282_s0 + $0x28] sm:$0xff]  }
 0x28e   :  { %v1406_v26 = vmul.f32 %v3548_v23, %v1403_v21  ;;  %v3506_v21 = vld [vmem:[%s4282_s0 + $0x30] sm:$0xff]  }
 0x28f   :  { %v1104_v27 = vsub.f32 %v1102_v22, %v1103_v24  ;;  %v1111_v28 = vmul.f32 %v1109_v25, %v4005_v14  ;;  %v1112_v29 = vmul.f32 %v1109_v25, %v961_v17  ;;  %v3508_v22 = vld [vmem:[%s4282_s0 + $0x38] sm:$0xff]  }
 0x290   :  { %v1408_v31 = vmul.f32 %v1406_v26, %v1390_v39  ;;  %v1414_v33 = vrot.slane %v1406_v26, %v4021_v15  ;;  %v3481_v39 = vld [vmem:[%s3778_s4] sm:$0xff]   ;;  %3194 = vmatpush3.bf16.msra.mxu1 %v3502_v18 }
 0x291   :  { %v1117_v36 = vrot.slane %v1104_v27, %v4021_v15  ;;  %3195 = vmatprep.subr.bf16.mxu1 %v3658_v34 }
 0x292   :  { %v1409_v37 = vsub.f32 %v1407_v30, %v1408_v31  ;;  %v1416_v38 = vmul.f32 %v1414_v33, %v4007_v16  ;;  %v1417_v35 = vmul.f32 %v1414_v33, %v4010_v20  ;;  %v3482_v16 = vld [vmem:[%s3778_s4 + $0x8] sm:$0xff]   ;;  %s2189_s4 = sadd.f32 1.0, %s2931_s12 }
 0x293   :  { %v1119_v40 = vadd.f32 %v1117_v36, %v1111_v28  ;;  %v1120_v41 = vadd.f32 %v1117_v36, %v1112_v29 }
 0x294   :  { %v1422_v32 = vrot.slane %v1409_v37, %v4021_v15  ;;  %3196 = vmatpush3.bf16.msra.mxu1 %v3504_v19 }
 0x295   :  { %v1122_v42 = vmax.f32 %v1120_v41, 0.0  ;;  %v1121_v14 = vmax.f32 %v1119_v40, 0.0  ;;  %3197 = vmatprep.subr.bf16.mxu1 %v3658_v34 }
 0x296   :  { %v1425_v17 = vadd.f32 %v1422_v32, %v1417_v35  ;;  %v1424_v43 = vadd.f32 %v1422_v32, %v1416_v38 }
 0x297   :  { %v1123_v44 = vpack.c.bf16 %v1122_v42, %v1121_v14 }
 0x298   :  { %v1427_v45 = vmax.f32 %v1425_v17, 0.0  ;;  %v1426_v58 = vmax.f32 %v1424_v43, 0.0  ;;  %3198 = vmatpush3.bf16.msra.mxu1 %v3506_v21 }
 0x299   :  { %1253 = vmatmul.mubr.bf16.vlgmr.msra.gmra.mrb[20].mxu0 %v1123_v44  ;;  %3199 = vmatprep.subr.bf16.mxu1 %v3658_v34 }
 0x29a   :  { %3126 = vmatpush3.bf16.msra.mxu0 %v3481_v39  ;;  %3141 = vmatprep.mubr.msk.bf16.mxu0 %vm3659_vm2, %v3658_v34  ;;  %v1428_v20 = vpack.c.bf16 %v1427_v45, %v1426_v58 }
 0x29b   :  { %3127 = vmatprep.subr.bf16.mxu0 %v3658_v34 }
 0x29c   :  { %3200 = vmatpush3.bf16.msra.mxu1 %v3508_v22 }
 0x29e   :  { %3128 = vmatpush3.bf16.msra.mxu0 %v3482_v16 }
 0x29f   :  { %3129 = vmatprep.subr.bf16.mxu0 %v3658_v34 }
 0x2a2   :  { %3130 = vmatpush3.bf16.msra.mxu0 %v3483_v59 }
 0x2a3   :  { %3131 = vmatprep.subr.bf16.mxu0 %v3658_v34 }
 0x2a6   :  { %3132 = vmatpush3.bf16.msra.mxu0 %v3484_v60 }
 0x2a7   :  { %3133 = vmatprep.subr.bf16.mxu0 %v3658_v34 }
 0x2aa   :  { %3134 = vmatpush3.bf16.msra.mxu0 %v3485_v61 }
 0x2ab   :  { %3135 = vmatprep.subr.bf16.mxu0 %v3658_v34 }
 0x2ae   :  { %3136 = vmatpush3.bf16.msra.mxu0 %v3486_v62 }
 0x2af   :  { %3137 = vmatprep.subr.bf16.mxu0 %v3658_v34 }
 0x2b2   :  { %3138 = vmatpush3.bf16.msra.mxu0 %v3487_v63 }
 0x2b3   :  { %3139 = vmatprep.subr.bf16.mxu0 %v3658_v34 }
 0x2b6   :  { %3140 = vmatpush3.bf16.msra.mxu0 %v3488_v0 }
 0x2b7   :  { %3145 = vmatprep.subr.bf16.mxu0 %v3658_v34 }
 0x2b9   :  { %3142 = vmatmul.mubr.bf16.vlgmr.msra.gmra.mrb[24].mxu0 %v1428_v20 }
 0x2ba   :  { %3161 = vmatprep.mubr.msk.bf16.mxu0 %vm3659_vm2, %v3658_v34  ;;  %3146 = vmatpush3.bf16.msra.mxu0 %v3489_v1 }
 0x2bb   :  { %3147 = vmatprep.subr.bf16.mxu0 %v3658_v34 }
 0x2be   :  { %3148 = vmatpush3.bf16.msra.mxu0 %v3490_v2 }
 0x2bf   :  { %3149 = vmatprep.subr.bf16.mxu0 %v3658_v34 }
 0x2c2   :  { %3150 = vmatpush3.bf16.msra.mxu0 %v3491_v3 }
 0x2c3   :  { %3151 = vmatprep.subr.bf16.mxu0 %v3658_v34 }
 0x2c6   :  { %3152 = vmatpush3.bf16.msra.mxu0 %v3492_v4 }
 0x2c7   :  { %3153 = vmatprep.subr.bf16.mxu0 %v3658_v34 }
 0x2ca   :  { %3154 = vmatpush3.bf16.msra.mxu0 %v3493_v5 }
 0x2cb   :  { %3155 = vmatprep.subr.bf16.mxu0 %v3658_v34 }
 0x2ce   :  { %3156 = vmatpush3.bf16.msra.mxu0 %v3495_v7 }
 0x2cf   :  { %3157 = vmatprep.subr.bf16.mxu0 %v3658_v34 }
 0x2d2   :  { %3158 = vmatpush3.bf16.msra.mxu0 %v3497_v9 }
 0x2d3   :  { %3159 = vmatprep.subr.bf16.mxu0 %v3658_v34 }
 0x2d6   :  { %3160 = vmatpush3.bf16.msra.mxu0 %v3499_v11 }
 0x2d7   :  { %3165 = vmatprep.subr.bf16.mxu0 %v3658_v34 }
 0x36c   :  { %v4084_v23 = vpop.f32.mrb[20].mxu0 }
 0x36d   :  { %v4086_v24 = vpop.f32.mrb[21].mxu0 }
 0x36e   :  { %v4088_v25 = vpop.f32.mrb[22].mxu0 }
 0x36f   :  { %v1263_v26 = vadd.f32 %v4088_v25, %v4084_v23  ;;  %v4092_v27 = vpop.f32.mrb[23].mxu0 }
 0x370   :  { %v1270_v28 = vadd.f32 %v4092_v27, %v4086_v24 }
 0x371   :  { %v1264_v29 = vrot.slane %v1263_v26, 4 }
 0x372   :  { %v1271_v30 = vrot.slane %v1270_v28, 4 }
 0x373   :  { %v1265_v31 = vadd.f32 %v1264_v29, %v1263_v26 }
 0x374   :  { %v1272_v33 = vadd.f32 %v1271_v30, %v1270_v28 }
 0x375   :  { %v1266_v36 = vrot.slane %v1265_v31, 2 }
 0x376   :  { %v1273_v37 = vrot.slane %v1272_v33, 2 }
 0x377   :  { %v1267_v38 = vadd.f32 %v1266_v36, %v1265_v31 }
 0x378   :  { %v1274_v35 = vadd.f32 %v1273_v37, %v1272_v33  ;;  %v3660_v33 = vmov 1966171168  }
 0x379   :  { %v1268_v40 = vrot.slane %v1267_v38, 1  ;;  %v1312_v36 = vunpack.c.l.s4 %v3660_v33 }
 0x37a   :  { %v1275_v41 = vrot.slane %v1274_v35, 1 }
 0x37b   :  { %v1269_v32 = vadd.f32 %v1268_v40, %v1267_v38 }
 0x37c   :  { %v1276_v42 = vadd.f32 %v1275_v41, %v1274_v35  ;;  %v1313_v35 = vunpack.c.0.s8 %v1312_v36 }
 0x37d   :  { %v4096_v14 = vmul.f32 0.0625, %v1269_v32 }
 0x37e   :  { %v4098_v17 = vmul.f32 0.0625, %v1276_v42  ;;  %v1316_v42 = vsub.s32 %v1313_v35, %v4017_v12 }
 0x37f   :  { %v1279_v39 = vsub.f32 %v4084_v23, %v4096_v14  ;;  %v1281_v43 = vsub.f32 %v4088_v25, %v4096_v14 }
 0x380   :  { %v1280_v44 = vsub.f32 %v4086_v24, %v4098_v17  ;;  %v1282_v45 = vsub.f32 %v4092_v27, %v4098_v17 }
 0x381   :  { %v1283_v58 = vmul.f32 %v1279_v39, %v1279_v39  ;;  %v1285_v16 = vmul.f32 %v1281_v43, %v1281_v43 }
 0x382   :  { %v1284_v20 = vmul.f32 %v1280_v44, %v1280_v44  ;;  %v1286_v59 = vmul.f32 %v1282_v45, %v1282_v45 }
 0x383   :  { %v1287_v60 = vadd.f32 %v1285_v16, %v1283_v58 }
 0x384   :  { %v1294_v61 = vadd.f32 %v1286_v59, %v1284_v20 }
 0x385   :  { %v1288_v62 = vrot.slane %v1287_v60, 4 }
 0x386   :  { %v1295_v63 = vrot.slane %v1294_v61, 4 }
 0x387   :  { %v1289_v0 = vadd.f32 %v1288_v62, %v1287_v60  ;;  %v1303_v60 = vld [vmem:[%s4283_s5] sm:$0x3]  ;;  %v1335_v62 = vsub.s32 1, %v4017_v12 }
 0x388   :  { %v1296_v1 = vadd.f32 %v1295_v63, %v1294_v61 }
 0x389   :  { %v1290_v2 = vrot.slane %v1289_v0, 2 }
 0x38a   :  { %v1297_v3 = vrot.slane %v1296_v1, 2 }
 0x38b   :  { %v1291_v4 = vadd.f32 %v1290_v2, %v1289_v0 }
 0x38c   :  { %v1298_v5 = vadd.f32 %v1297_v3, %v1296_v1  ;;  %v4108_v6 = vpop.f32.mrb[24].mxu0 }
 0x38d   :  { %v1292_v7 = vrot.slane %v1291_v4, 1  ;;  %v3143_v8 = vpop.f32.mrb[25].mxu0 }
 0x38e   :  { %v1299_v9 = vrot.slane %v1298_v5, 1  ;;  %v4110_v10 = vpop.f32.mrb[26].mxu0 }
 0x38f   :  { %v1293_v11 = vadd.f32 %v1292_v7, %v1291_v4  ;;  %v1534_v13 = vadd.f32 %v4110_v10, %v4108_v6  ;;  %v3144_v18 = vpop.f32.mrb[27].mxu0 }
 0x390   :  { %v1300_v19 = vadd.f32 %v1299_v9, %v1298_v5 }
 0x391   :  { %v1301_v21 = vmul.f32 0.0625, %v1293_v11  ;;  %v1535_v22 = vrot.slane %v1534_v13, 4 }
 0x392   :  { %v1302_v26 = vmul.f32 0.0625, %v1300_v19 }
 0x393   :  { %v1304_v28 = vadd.f32 1e-05, %v1301_v21  ;;  %v1536_v29 = vadd.f32 %v1535_v22, %v1534_v13  ;;  %v1327_v22 = vld [vmem:[%s4284_s9] sm:$0x3] }
 0x394   :  { %v1305_v30 = vadd.f32 1e-05, %v1302_v26 }
 0x395   :  { %3549 = vrsqrt.f32 %v1304_v28  ;;  %v1537_v31 = vrot.slane %v1536_v29, 2 }
 0x396   :  { %3551 = vrsqrt.f32 %v1305_v30 }
 0x397   :  { %v1538_v37 = vadd.f32 %v1537_v31, %v1536_v29 }
 0x399   :  { %v1539_v38 = vrot.slane %v1538_v37, 1 }
 0x39b   :  { %v1540_v40 = vadd.f32 %v1539_v38, %v1538_v37 }
 0x39d   :  { %v4114_v41 = vmul.f32 0.0625, %v1540_v40 }
 0x39f   :  { %v3550_v32 = vpop.eup %3549  ;;  %v1542_v39 = vsub.f32 %v4108_v6, %v4114_v41  ;;  %v1543_v43 = vsub.f32 %v4110_v10, %v4114_v41 }
 0x3a0   :  { %v3552_v44 = vpop.eup %3551 }
 0x3a1   :  { %v1310_v45 = vcombine.low %v3550_v32, %v3552_v44  ;;  %v1544_v58 = vmul.f32 %v1542_v39, %v1542_v39  ;;  %v1545_v16 = vmul.f32 %v1543_v43, %v1543_v43 }
 0x3a3   :  { %v1317_v20 = vrot.slane %v1310_v45, %v1316_v42  ;;  %v1546_v59 = vadd.f32 %v1545_v16, %v1544_v58  ;;  %v3501_v16 = vld [vmem:[%s3738_s6] sm:$0xff]  }
 0x3a5   :  { %v1324_v61 = vrot.slane %v1317_v20, %v1316_v42  ;;  %v1547_v63 = vrot.slane %v1546_v59, 4 }
 0x3a7   :  { %v1326_v0 = vmul.f32 %v1324_v61, %v1303_v60  ;;  %v1548_v1 = vadd.f32 %v1547_v63, %v1546_v59  ;;  %v1554_v59 = vld [vmem:[%s4285_s21] sm:$0x1]  ;;  %v3505_v63 = vld [vmem:[%s3738_s6 + $0x10] sm:$0xff]  }
 0x3a8   :  { %v1558_v60 = vld [vmem:[%s4286_s29] sm:$0x1] }
 0x3a9   :  { %v1332_v2 = vrot.slane %v1326_v0, %v4021_v15  ;;  %v1336_v3 = vrot.slane %v1326_v0, %v1335_v62  ;;  %v1549_v4 = vrot.slane %v1548_v1, 2 }
 0x3ab   :  { %v1339_v5 = vmul.f32 %v1332_v2, %v4096_v14  ;;  %v1340_v7 = vmul.f32 %v1336_v3, %v4098_v17  ;;  %v1361_v8 = vmul.f32 %v1336_v3, %v4086_v24  ;;  %v1363_v9 = vmul.f32 %v1336_v3, %v4092_v27 }
 0x3ac   :  { %v1550_v11 = vadd.f32 %v1549_v4, %v1548_v1  ;;  %v1360_v12 = vmul.f32 %v1332_v2, %v4084_v23  ;;  %v1362_v13 = vmul.f32 %v1332_v2, %v4088_v25  ;;  %v1582_v17 = vstv %s1581_s17  ;;  %v3507_v4 = vld [vmem:[%s3738_s6 + $0x18] sm:$0xff]  }
 0x3ad   :  { %v1343_v18 = vcombine.low %v1339_v5, %v1340_v7  ;;  %v1588_v36 = vmul.f32 %v3899_v48, %v1582_v17  ;;  %v1583_v37 = vmul.f32 %v1582_v17, %v3902_v51  ;;  %v1589_v38 = vmul.f32 %v3905_v55, %v1582_v17  ;;  %v3503_v55 = vld [vmem:[%s3738_s6 + $0x8] sm:$0xff]  }
 0x3ae   :  { %v1551_v19 = vrot.slane %v1550_v11, 1  ;;  %v1584_v35 = vmul.f32 %v1582_v17, %v3907_v57 }
 0x3af   :  { %v1350_v21 = vrot.slane %v1343_v18, %v1316_v42 }
 0x3b0   :  { %v1552_v26 = vadd.f32 %v1551_v19, %v1550_v11  ;;  %v3511_v11 = vld [vmem:[%s3738_s6 + $0x30] sm:$0xff]  }
 0x3b1   :  { %v1357_v28 = vrot.slane %v1350_v21, %v1316_v42 }
 0x3b2   :  { %v1553_v29 = vmul.f32 0.0625, %v1552_v26 }
 0x3b3   :  { %v1359_v14 = vsub.f32 %v1327_v22, %v1357_v28 }
 0x3b4   :  { %v1555_v30 = vadd.f32 1e-05, %v1553_v29 }
 0x3b5   :  { %v1368_v24 = vrot.slane %v1359_v14, %v4021_v15  ;;  %v1372_v31 = vrot.slane %v1359_v14, %v1335_v62 }
 0x3b6   :  { %3553 = vrsqrt.f32 %v1555_v30 }
 0x3b7   :  { %v1376_v27 = vadd.f32 %v1372_v31, %v1361_v8  ;;  %v1378_v23 = vadd.f32 %v1372_v31, %v1363_v9  ;;  %v1375_v33 = vadd.f32 %v1368_v24, %v1360_v12  ;;  %v1377_v25 = vadd.f32 %v1368_v24, %v1362_v13  ;;  %v3509_v9 = vld [vmem:[%s3738_s6 + $0x20] sm:$0xff]   ;;  %v3512_v12 = vld [vmem:[%s3738_s6 + $0x38] sm:$0xff]  }
 0x3b9   :  { %v1380_v40 = vmax.f32 %v1376_v27, 0.0  ;;  %v1382_v32 = vmax.f32 %v1378_v23, 0.0  ;;  %v1379_v42 = vmax.f32 %v1375_v33, 0.0  ;;  %v1381_v39 = vmax.f32 %v1377_v25, 0.0 }
 0x3bb   :  { %v1591_v43 = vadd.f32 %v1589_v38, %v1382_v32  ;;  %v1590_v44 = vadd.f32 %v1588_v36, %v1380_v40  ;;  %v1585_v45 = vadd.f32 %v1583_v37, %v1379_v42  ;;  %v1586_v58 = vadd.f32 %v1584_v35, %v1381_v39  ;;  %v1823_v39 = vld [vmem:[%s4287_s3] sm:$0x1] }
 0x3bd   :  { %v1592_v20 = vpack.c.bf16 %v1591_v43, %v1590_v44  ;;  %v1587_v48 = vpack.c.bf16 %v1586_v58, %v1585_v45  ;;  %v1827_v45 = vld [vmem:[%s4288_s8] sm:$0x1] }
 0x3bf   :  { %3162 = vmatmul.mubr.bf16.vlgmr.msra.gmra.mrb[28].mxu0 %v1592_v20 }
 0x3c0   :  { %v3554_v51 = vpop.eup %3553  ;;  %3166 = vmatpush3.bf16.msra.mxu0 %v3501_v16  ;;  %3181 = vmatprep.mubr.msk.bf16.mxu0 %vm3659_vm2, %v3658_v34 }
 0x3c1   :  { %v1557_v57 = vmul.f32 %v3554_v51, %v1554_v59  ;;  %3167 = vmatprep.subr.bf16.mxu0 %v3658_v34 }
 0x3c3   :  { %v1559_v61 = vmul.f32 %v1557_v57, %v4114_v41  ;;  %v1565_v62 = vrot.slane %v1557_v57, %v4021_v15 }
 0x3c4   :  { %3168 = vmatpush3.bf16.msra.mxu0 %v3503_v55 }
 0x3c5   :  { %v1560_v0 = vsub.f32 %v1558_v60, %v1559_v61  ;;  %v1567_v1 = vmul.f32 %v1565_v62, %v4108_v6  ;;  %v1568_v2 = vmul.f32 %v1565_v62, %v4110_v10  ;;  %3169 = vmatprep.subr.bf16.mxu0 %v3658_v34  ;;  %v3510_v10 = vld [vmem:[%s3738_s6 + $0x28] sm:$0xff]   ;;  %v3513_v62 = vld [vmem:[%s4289_s14] sm:$0xff]   ;;  %s2930_s6 = sld [smem:[#allocation2 + $0x1]] }
 0x3c7   :  { %v1573_v3 = vrot.slane %v1560_v0, %v4021_v15  ;;  %v3514_v0 = vld [vmem:[%s4289_s14 + $0x8] sm:$0xff]  }
 0x3c8   :  { %3170 = vmatpush3.bf16.msra.mxu0 %v3505_v63 }
 0x3c9   :  { %v1576_v5 = vadd.f32 %v1573_v3, %v1568_v2  ;;  %3171 = vmatprep.subr.bf16.mxu0 %v3658_v34  ;;  %v1575_v41 = vadd.f32 %v1573_v3, %v1567_v1  ;;  %v3515_v1 = vld [vmem:[%s4289_s14 + $0x10] sm:$0xff]   ;;  %v3516_v2 = vld [vmem:[%s4289_s14 + $0x18] sm:$0xff]   ;;  %v3517_v3 = vld [vmem:[%s4289_s14 + $0x20] sm:$0xff]  }
 0x3cb   :  { %v1577_v7 = vmax.f32 %v1575_v41, 0.0  ;;  %v1578_v8 = vmax.f32 %v1576_v5, 0.0  ;;  %v3519_v5 = vld [vmem:[%s4289_s14 + $0x30] sm:$0xff]   ;;  %v3520_v41 = vld [vmem:[%s4289_s14 + $0x38] sm:$0xff]   ;;  %s2187_s20 = sadd.f32 1.0, %s2930_s6 }
 0x3cc   :  { %3172 = vmatpush3.bf16.msra.mxu0 %v3507_v4  ;;  %v3518_v4 = vld [vmem:[%s4289_s14 + $0x28] sm:$0xff]  }
 0x3cd   :  { %v1579_v6 = vpack.c.bf16 %v1578_v8, %v1577_v7  ;;  %3173 = vmatprep.subr.bf16.mxu0 %v3658_v34  ;;  %v3521_v7 = vld [vmem:[%s4290_s19 + $0x40] sm:$0xff]   ;;  %v3522_v8 = vld [vmem:[%s4290_s19 + $0x48] sm:$0xff]  }
 0x3cf   :  { %3205 = vmatprep.subr.bf16.mxu1 %v1579_v6 }
 0x3d0   :  { %3174 = vmatpush3.bf16.msra.mxu0 %v3509_v9  ;;  %v3523_v9 = vld [vmem:[%s4290_s19 + $0x50] sm:$0xff]  }
 0x3d1   :  { %3175 = vmatprep.subr.bf16.mxu0 %v3658_v34 }
 0x3d4   :  { %3176 = vmatpush3.bf16.msra.mxu0 %v3510_v10  ;;  %v3525_v10 = vld [vmem:[%s4290_s19 + $0x60] sm:$0xff]  }
 0x3d5   :  { %3177 = vmatprep.subr.bf16.mxu0 %v3658_v34 }
 0x3d8   :  { %3178 = vmatpush3.bf16.msra.mxu0 %v3511_v11  ;;  %v3526_v11 = vld [vmem:[%s4290_s19 + $0x68] sm:$0xff]  }
 0x3d9   :  { %3179 = vmatprep.subr.bf16.mxu0 %v3658_v34 }
 0x3dc   :  { %3180 = vmatpush3.bf16.msra.mxu0 %v3512_v12  ;;  %v3527_v12 = vld [vmem:[%s4290_s19 + $0x70] sm:$0xff]  }
 0x3dd   :  { %3223 = vmatprep.subr.bf16.mxu0 %v3521_v7 }
 0x3df   :  { %3182 = vmatmul.mubr.bf16.vlgmr.msra.gmra.mrb[28].mxu0 %v1587_v48 }
 0x3e0   :  { %3224 = vmatpush3.bf16.msra.mxu0 %v3521_v7 }
 0x3e1   :  { %3225 = vmatprep.subr.bf16.mxu0 %v3522_v8 }
 0x3e4   :  { %3226 = vmatpush3.bf16.msra.mxu0 %v3522_v8 }
 0x3e5   :  { %3227 = vmatprep.subr.bf16.mxu0 %v3523_v9 }
 0x3e8   :  { %3228 = vmatpush3.bf16.msra.mxu0 %v3523_v9 }
 0x4b2   :  { %v1796_v13 = vpop.f32.mrb[28].mxu0 }
 0x4b3   :  { %v3183_v18 = vpop.f32.mrb[29].mxu0 }
 0x4b4   :  { %v1799_v19 = vpop.f32.mrb[30].mxu0  ;;  %v4189_v18 = vld [vmem:[%s4290_s19] sm:$0xff]  }
 0x4b5   :  { %v1803_v21 = vadd.f32 %v1799_v19, %v1796_v13  ;;  %v3184_v22 = vpop.f32.mrb[31].mxu0 }
 0x4b7   :  { %v1804_v26 = vrot.slane %v1803_v21, 4 }
 0x4b9   :  { %v1805_v28 = vadd.f32 %v1804_v26, %v1803_v21 }
 0x4bb   :  { %v1806_v29 = vrot.slane %v1805_v28, 2 }
 0x4bd   :  { %v1807_v14 = vadd.f32 %v1806_v29, %v1805_v28 }
 0x4bf   :  { %v1808_v30 = vrot.slane %v1807_v14, 1 }
 0x4c1   :  { %v1809_v17 = vadd.f32 %v1808_v30, %v1807_v14  ;;  %v2190_v14 = vstv %s2187_s20  ;;  %v2195_v30 = vstv %s2189_s4 }
 0x4c3   :  { %v1810_v24 = vmul.f32 0.0625, %v1809_v17 }
 0x4c5   :  { %v1811_v31 = vsub.f32 %v1796_v13, %v1810_v24  ;;  %v1812_v27 = vsub.f32 %v1799_v19, %v1810_v24 }
 0x4c7   :  { %v1813_v23 = vmul.f32 %v1811_v31, %v1811_v31  ;;  %v1814_v34 = vmul.f32 %v1812_v27, %v1812_v27  ;;  %v2193_v31 = vmul.f32 %v3972_v46, %v2190_v14 }
 0x4c9   :  { %v1815_v33 = vadd.f32 %v1814_v34, %v1813_v23 }
 0x4cb   :  { %v1816_v25 = vrot.slane %v1815_v33, 4 }
 0x4cd   :  { %v1817_v36 = vadd.f32 %v1816_v25, %v1815_v33  ;;  %v2191_v33 = vmul.f32 %v2190_v14, %v3974_v47 }
 0x4cf   :  { %v1818_v37 = vrot.slane %v1817_v36, 2 }
 0x4d1   :  { %v1819_v38 = vadd.f32 %v1818_v37, %v1817_v36  ;;  %v2194_v37 = vmul.f32 %v3976_v49, %v2190_v14  ;;  %v2210_v49 = vmul.f32 %v2190_v14, %v3982_v53 }
 0x4d3   :  { %v1820_v35 = vrot.slane %v1819_v38, 1 }
 0x4d5   :  { %v1821_v40 = vadd.f32 %v1820_v35, %v1819_v38 }
 0x4d7   :  { %v1822_v32 = vmul.f32 0.0625, %v1821_v40 }
 0x4d9   :  { %v1824_v42 = vadd.f32 1e-05, %v1822_v32 }
 0x4db   :  { %3555 = vrsqrt.f32 %v1824_v42  ;;  %v2192_v42 = vmul.f32 %v2190_v14, %v3978_v50 }
 0x4e5   :  { %v3556_v43 = vpop.eup %3555 }
 0x4e6   :  { %v1826_v44 = vmul.f32 %v3556_v43, %v1823_v39 }
 0x4e8   :  { %v1828_v58 = vmul.f32 %v1826_v44, %v1810_v24  ;;  %v1834_v16 = vrot.slane %v1826_v44, %v4021_v15 }
 0x4ea   :  { %v1829_v20 = vsub.f32 %v1827_v45, %v1828_v58  ;;  %v1836_v48 = vmul.f32 %v1834_v16, %v1796_v13  ;;  %v1837_v59 = vmul.f32 %v1834_v16, %v1799_v19  ;;  %v3528_v13 = vld [vmem:[%s4290_s19 + $0x78] sm:$0xff]  }
 0x4ec   :  { %v1842_v51 = vrot.slane %v1829_v20, %v4021_v15  ;;  %v2212_v20 = vmul.f32 %v3980_v52, %v2190_v14  ;;  %v2211_v52 = vmul.f32 %v2190_v14, %v3986_v56 }
 0x4ee   :  { %v1844_v55 = vadd.f32 %v1842_v51, %v1836_v48  ;;  %v1845_v57 = vadd.f32 %v1842_v51, %v1837_v59  ;;  %v2213_v51 = vmul.f32 %v3984_v54, %v2190_v14 }
 0x4f0   :  { %v1847_v60 = vmax.f32 %v1845_v57, 0.0  ;;  %v1846_v61 = vmax.f32 %v1844_v55, 0.0 }
 0x4f2   :  { %v1848_v63 = vpack.c.bf16 %v1847_v60, %v1846_v61 }
 0x4f4   :  { %3202 = vmatmul.mubr.bf16.vlgmr.msra.gmra.mrb[8].mxu1 %v1848_v63 }
 0x4f5   :  { %3206 = vmatpush3.bf16.msra.mxu1 %v1579_v6  ;;  %3207 = vmatprep.mubr.msk.bf16.mxu1 %vm350_vm1, %v3513_v62  ;;  %v3524_v6 = vld [vmem:[%s4290_s19 + $0x58] sm:$0xff]  }
 0x4f6   :  { %3229 = vmatprep.subr.bf16.mxu0 %v3524_v6 }
 0x4f7   :  { %3230 = vmatpush3.bf16.msra.mxu0 %v3524_v6 }
 0x4f8   :  { %3231 = vmatprep.subr.bf16.mxu0 %v3525_v10 }
 0x4fb   :  { %3232 = vmatpush3.bf16.msra.mxu0 %v3525_v10 }
 0x4fc   :  { %3208 = vmatmul.mubr.msk.bf16.vlgmr.msra.gmra.mrb[12].mxu1 %vm350_vm1, %v3514_v0  ;;  %3233 = vmatprep.subr.bf16.mxu0 %v3526_v11 }
 0x4fd   :  { %3211 = vmatprep.mubr.msk.bf16.mxu1 %vm350_vm1, %v3515_v1 }
 0x4ff   :  { %3234 = vmatpush3.bf16.msra.mxu0 %v3526_v11 }
 0x500   :  { %3235 = vmatprep.subr.bf16.mxu0 %v3527_v12 }
 0x503   :  { %3236 = vmatpush3.bf16.msra.mxu0 %v3527_v12 }
 0x504   :  { %3212 = vmatmul.mubr.msk.bf16.gmra.mrb[16].mxu1 %vm350_vm1, %v3516_v2  ;;  %3237 = vmatprep.subr.bf16.mxu0 %v3528_v13 }
 0x505   :  { %3215 = vmatprep.mubr.msk.bf16.mxu1 %vm350_vm1, %v3517_v3 }
 0x507   :  { %3238 = vmatpush3.bf16.msra.mxu0 %v3528_v13 }
 0x508   :  { %3243 = vmatprep.subr.bf16.mxu0 %v4189_v18 }
 0x50c   :  { %3216 = vmatmul.mubr.msk.bf16.gmra.mrb[20].mxu1 %vm350_vm1, %v3518_v4 }
 0x50d   :  { %3219 = vmatprep.mubr.msk.bf16.mxu1 %vm350_vm1, %v3519_v5 }
 0x514   :  { %3220 = vmatmul.mubr.msk.bf16.gmra.mrb[24].mxu1 %vm350_vm1, %v3520_v41 }
 0x5c7   :  { %v4192_v19 = vpop.f32.mrb[8].mxu1 }
 0x5c8   :  { %v3203_v21 = vpop.f32.mrb[9].mxu1 }
 0x5c9   :  { %v4194_v22 = vpop.f32.mrb[10].mxu1 }
 0x5ca   :  { %v1954_v26 = vadd.f32 %v4194_v22, %v4192_v19  ;;  %v3204_v28 = vpop.f32.mrb[11].mxu1 }
 0x5cc   :  { %v1955_v29 = vrot.slane %v1954_v26, 4 }
 0x5ce   :  { %v1956_v17 = vadd.f32 %v1955_v29, %v1954_v26 }
 0x5cf   :  { %v3209_v24 = vpop.f32.mrb[12].mxu1 }
 0x5d0   :  { %v1957_v27 = vrot.slane %v1956_v17, 2  ;;  %v2198_v23 = vmul.f32 %v3209_v24, %v2195_v30  ;;  %v2123_v34 = vpop.f32.mrb[13].mxu1 }
 0x5d1   :  { %v2196_v25 = vmul.f32 %v2195_v30, %v2123_v34  ;;  %v3210_v36 = vpop.f32.mrb[14].mxu1 }
 0x5d2   :  { %v1958_v38 = vadd.f32 %v1957_v27, %v1956_v17  ;;  %v2199_v35 = vmul.f32 %v3210_v36, %v2195_v30  ;;  %v2126_v40 = vpop.f32.mrb[15].mxu1  ;;  %v2202_v32 = vadd.f32 %v2198_v23, %v2193_v31 }
 0x5d3   :  { %v2197_v39 = vmul.f32 %v2195_v30, %v2126_v40  ;;  %v2200_v43 = vadd.f32 %v2196_v25, %v2191_v33  ;;  %v3531_v40 = vld [vmem:[%s4290_s19 + $0x10] sm:$0xff]  }
 0x5d4   :  { %v1959_v44 = vrot.slane %v1958_v38, 1  ;;  %v2203_v45 = vadd.f32 %v2199_v35, %v2194_v37  ;;  %v3530_v35 = vld [vmem:[%s4290_s19 + $0x8] sm:$0xff]  }
 0x5d5   :  { %v2201_v46 = vadd.f32 %v2197_v39, %v2192_v42  ;;  %v1974_v42 = vld [vmem:[%s4291_s28] sm:$0x1] }
 0x5d6   :  { %v1960_v58 = vadd.f32 %v1959_v44, %v1958_v38 }
 0x5d7   :  { %v3213_v16 = vpop.f32.mrb[16].mxu1 }
 0x5d8   :  { %v4203_v47 = vmul.f32 0.0625, %v1960_v58  ;;  %v2216_v48 = vmul.f32 %v3213_v16, %v2195_v30  ;;  %v2139_v59 = vpop.f32.mrb[17].mxu1 }
 0x5d9   :  { %v2214_v55 = vmul.f32 %v2195_v30, %v2139_v59  ;;  %v3214_v57 = vpop.f32.mrb[18].mxu1 }
 0x5da   :  { %v1962_v50 = vsub.f32 %v4192_v19, %v4203_v47  ;;  %v1963_v60 = vsub.f32 %v4194_v22, %v4203_v47  ;;  %v2217_v61 = vmul.f32 %v3214_v57, %v2195_v30  ;;  %v2142_v62 = vpop.f32.mrb[19].mxu1  ;;  %v2220_v63 = vadd.f32 %v2216_v48, %v2212_v20 }
 0x5db   :  { %v2215_v0 = vmul.f32 %v2195_v30, %v2142_v62  ;;  %v2218_v1 = vadd.f32 %v2214_v55, %v2210_v49  ;;  %v3535_v49 = vld [vmem:[%s4290_s19 + $0x30] sm:$0xff]   ;;  %v3540_v62 = vld [vmem:[%s4293_s2 + $0x18] sm:$0xff]  }
 0x5dc   :  { %v1964_v2 = vmul.f32 %v1962_v50, %v1962_v50  ;;  %v1965_v3 = vmul.f32 %v1963_v60, %v1963_v60  ;;  %v2221_v53 = vadd.f32 %v2217_v61, %v2213_v51  ;;  %v3536_v50 = vld [vmem:[%s4290_s19 + $0x38] sm:$0xff]   ;;  %v3539_v61 = vld [vmem:[%s4293_s2 + $0x10] sm:$0xff]  }
 0x5dd   :  { %v2219_v4 = vadd.f32 %v2215_v0, %v2211_v52  ;;  %v3542_v52 = vld [vmem:[%s4293_s2 + $0x28] sm:$0xff]   ;;  %v3543_v0 = vld [vmem:[%s4293_s2 + $0x30] sm:$0xff]  }
 0x5de   :  { %v1966_v54 = vadd.f32 %v1965_v3, %v1964_v2 }
 0x5df   :  { %v3217_v5 = vpop.f32.mrb[20].mxu1 }
 0x5e0   :  { %v1967_v41 = vrot.slane %v1966_v54, 4  ;;  %v4212_v7 = vadd.f32 %v3217_v5, %v2202_v32  ;;  %v2155_v8 = vpop.f32.mrb[21].mxu1  ;;  %v3532_v32 = vld [vmem:[%s4290_s19 + $0x18] sm:$0xff]  }
 0x5e1   :  { %v2204_v9 = vadd.f32 %v2200_v43, %v2155_v8  ;;  %v3218_v6 = vpop.f32.mrb[22].mxu1  ;;  %v3533_v43 = vld [vmem:[%s4290_s19 + $0x20] sm:$0xff]  }
 0x5e2   :  { %v1968_v10 = vadd.f32 %v1967_v41, %v1966_v54  ;;  %v4214_v11 = vadd.f32 %v3218_v6, %v2203_v45  ;;  %v2158_v12 = vpop.f32.mrb[23].mxu1  ;;  %v1978_v45 = vld [vmem:[%s4292_s1] sm:$0x1] }
 0x5e3   :  { %v2205_v13 = vadd.f32 %v2201_v46, %v2158_v12 }
 0x5e4   :  { %v1969_v56 = vrot.slane %v1968_v10, 2  ;;  %v2209_v21 = vpack.c.bf16 %v4214_v11, %v4212_v7 }
 0x5e5   :  { %v2208_v26 = vpack.c.bf16 %v2205_v13, %v2204_v9 }
 0x5e6   :  { %v1970_v28 = vadd.f32 %v1969_v56, %v1968_v10 }
 0x5e7   :  { %v3221_v29 = vpop.f32.mrb[24].mxu1 }
 0x5e8   :  { %v1971_v14 = vrot.slane %v1970_v28, 1  ;;  %v2224_v30 = vadd.f32 %v3221_v29, %v2220_v63  ;;  %v2171_v17 = vpop.f32.mrb[25].mxu1  ;;  %v3541_v63 = vld [vmem:[%s4293_s2 + $0x20] sm:$0xff]  }
 0x5e9   :  { %v2222_v24 = vadd.f32 %v2218_v1, %v2171_v17  ;;  %v3222_v31 = vpop.f32.mrb[26].mxu1  ;;  %v3544_v1 = vld [vmem:[%s4293_s2 + $0x38] sm:$0xff]  }
 0x5ea   :  { %v1972_v27 = vadd.f32 %v1971_v14, %v1970_v28  ;;  %v2225_v23 = vadd.f32 %v3222_v31, %v2221_v53  ;;  %v2174_v34 = vpop.f32.mrb[27].mxu1 }
 0x5eb   :  { %v2223_v33 = vadd.f32 %v2219_v4, %v2174_v34 }
 0x5ec   :  { %v1973_v25 = vmul.f32 0.0625, %v1972_v27  ;;  %v2227_v36 = vpack.c.bf16 %v2225_v23, %v2224_v30 }
 0x5ed   :  { %v2226_v37 = vpack.c.bf16 %v2223_v33, %v2222_v24 }
 0x5ee   :  { %v1975_v38 = vadd.f32 1e-05, %v1973_v25 }
 0x5ef   :  { %3239 = vmatprep.mubr.bf16.mxu0 %v2226_v37 }
 0x5f0   :  { %3557 = vrsqrt.f32 %v1975_v38  ;;  %3240 = vmatmul.mubr.bf16.vlgmr.msra.gmra.mrb[32].mxu0 %v2227_v36 }
 0x5f1   :  { %3244 = vmatpush3.bf16.msra.mxu0 %v4189_v18  ;;  %3259 = vmatprep.mubr.bf16.mxu0 %v2208_v26  ;;  %v3534_v18 = vld [vmem:[%s4290_s19 + $0x28] sm:$0xff]  }
 0x5f2   :  { %3245 = vmatprep.subr.bf16.mxu0 %v3530_v35 }
 0x5f5   :  { %3246 = vmatpush3.bf16.msra.mxu0 %v3530_v35  ;;  %v2483_v35 = vld [vmem:[%s4294_s7] sm:$0x1] }
 0x5f6   :  { %3247 = vmatprep.subr.bf16.mxu0 %v3531_v40 }
 0x5f9   :  { %3248 = vmatpush3.bf16.msra.mxu0 %v3531_v40 }
 0x5fa   :  { %v3558_v39 = vpop.eup %3557  ;;  %3249 = vmatprep.subr.bf16.mxu0 %v3532_v32 }
 0x5fb   :  { %v1977_v44 = vmul.f32 %v3558_v39, %v1974_v42  ;;  %v2487_v42 = vld [vmem:[%s4295_s10] sm:$0x1] }
 0x5fd   :  { %v1979_v46 = vmul.f32 %v1977_v44, %v4203_v47  ;;  %v1985_v58 = vrot.slane %v1977_v44, %v4021_v15  ;;  %3250 = vmatpush3.bf16.msra.mxu0 %v3532_v32 }
 0x5fe   :  { %3251 = vmatprep.subr.bf16.mxu0 %v3533_v43 }
 0x5ff   :  { %v1980_v16 = vsub.f32 %v1978_v45, %v1979_v46  ;;  %v1987_v20 = vmul.f32 %v1985_v58, %v4192_v19  ;;  %v1988_v48 = vmul.f32 %v1985_v58, %v4194_v22  ;;  %v3537_v19 = vld [vmem:[%s4293_s2] sm:$0xff]   ;;  %v3538_v22 = vld [vmem:[%s4293_s2 + $0x8] sm:$0xff]  }
 0x600   :  { %3263 = vmatprep.subr.bf16.mxu1 %v3537_v19 }
 0x601   :  { %v1993_v59 = vrot.slane %v1980_v16, %v4021_v15  ;;  %3252 = vmatpush3.bf16.msra.mxu0 %v3533_v43  ;;  %3264 = vmatpush3.bf16.msra.mxu1 %v3537_v19 }
 0x602   :  { %3253 = vmatprep.subr.bf16.mxu0 %v3534_v18  ;;  %3265 = vmatprep.subr.bf16.mxu1 %v3538_v22 }
 0x603   :  { %v1996_v51 = vadd.f32 %v1993_v59, %v1988_v48  ;;  %v1995_v47 = vadd.f32 %v1993_v59, %v1987_v20 }
 0x605   :  { %3254 = vmatpush3.bf16.msra.mxu0 %v3534_v18  ;;  %v1997_v55 = vmax.f32 %v1995_v47, 0.0  ;;  %v1998_v57 = vmax.f32 %v1996_v51, 0.0  ;;  %3266 = vmatpush3.bf16.msra.mxu1 %v3538_v22 }
 0x606   :  { %3255 = vmatprep.subr.bf16.mxu0 %v3535_v49  ;;  %3267 = vmatprep.subr.bf16.mxu1 %v3539_v61 }
 0x607   :  { %v2969_v60 = vpack.c.bf16 %v1998_v57, %v1997_v55 }
 0x609   :  { %3256 = vmatpush3.bf16.msra.mxu0 %v3535_v49  ;;  %2970 = vst [vmem:[#allocation6] sm:$0xff] %v2969_v60   ;;  %3268 = vmatpush3.bf16.msra.mxu1 %v3539_v61 }
 0x60a   :  { %3257 = vmatprep.subr.bf16.mxu0 %v3536_v50  ;;  %3269 = vmatprep.subr.bf16.mxu1 %v3540_v62 }
 0x60d   :  { %3258 = vmatpush3.bf16.msra.mxu0 %v3536_v50  ;;  %3270 = vmatpush3.bf16.msra.mxu1 %v3540_v62 }
 0x60e   :  { %3271 = vmatprep.subr.bf16.mxu1 %v3541_v63 }
 0x610   :  { %3260 = vmatmul.mubr.bf16.vlgmr.msra.gmra.mrb[32].mxu0 %v2209_v21 }
 0x611   :  { %3272 = vmatpush3.bf16.msra.mxu1 %v3541_v63 }
 0x612   :  { %3273 = vmatprep.subr.bf16.mxu1 %v3542_v52 }
 0x615   :  { %3274 = vmatpush3.bf16.msra.mxu1 %v3542_v52 }
 0x616   :  { %3275 = vmatprep.subr.bf16.mxu1 %v3543_v0 }
 0x619   :  { %3276 = vmatpush3.bf16.msra.mxu1 %v3543_v0 }
 0x61a   :  { %3277 = vmatprep.subr.bf16.mxu1 %v3544_v1 }
 0x61d   :  { %3278 = vmatpush3.bf16.msra.mxu1 %v3544_v1 }
 0x6e3   :  { %v3261_v2 = vpop.f32.mrb[32].mxu0 }
 0x6e4   :  { %v2439_v3 = vpop.f32.mrb[33].mxu0 }
 0x6e5   :  { %v3262_v53 = vpop.f32.mrb[34].mxu0 }
 0x6e6   :  { %v2442_v4 = vpop.f32.mrb[35].mxu0 }
 0x6e7   :  { %v2454_v54 = vadd.f32 %v2442_v4, %v2439_v3 }
 0x6e9   :  { %v2455_v5 = vadd.f32 %v3261_v2, %v2454_v54 }
 0x6eb   :  { %v2456_v41 = vadd.f32 %v3262_v53, %v2455_v5 }
 0x6ed   :  { %v2457_v7 = vrot.slane %v2456_v41, 4 }
 0x6ef   :  { %v2458_v8 = vadd.f32 %v2457_v7, %v2456_v41 }
 0x6f1   :  { %v2459_v9 = vrot.slane %v2458_v8, 2 }
 0x6f3   :  { %v2460_v6 = vadd.f32 %v2459_v9, %v2458_v8 }
 0x6f5   :  { %v2461_v10 = vrot.slane %v2460_v6, 1 }
 0x6f7   :  { %v2462_v11 = vadd.f32 %v2461_v10, %v2460_v6 }
 0x6f9   :  { %v2464_v12 = vmul.f32 0.03125, %v2462_v11 }
 0x6fb   :  { %v2465_v13 = vsub.f32 %v2439_v3, %v2464_v12  ;;  %v2466_v56 = vsub.f32 %v2442_v4, %v2464_v12  ;;  %v2467_v21 = vsub.f32 %v3261_v2, %v2464_v12  ;;  %v2468_v26 = vsub.f32 %v3262_v53, %v2464_v12 }
 0x6fd   :  { %v2469_v28 = vmul.f32 %v2465_v13, %v2465_v13  ;;  %v2470_v29 = vmul.f32 %v2466_v56, %v2466_v56  ;;  %v2471_v14 = vmul.f32 %v2467_v21, %v2467_v21  ;;  %v2472_v17 = vmul.f32 %v2468_v26, %v2468_v26 }
 0x6ff   :  { %v2473_v30 = vadd.f32 %v2470_v29, %v2469_v28 }
 0x701   :  { %v2474_v24 = vadd.f32 %v2473_v30, %v2471_v14 }
 0x703   :  { %v2475_v31 = vadd.f32 %v2474_v24, %v2472_v17 }
 0x705   :  { %v2476_v27 = vrot.slane %v2475_v31, 4 }
 0x707   :  { %v2477_v23 = vadd.f32 %v2476_v27, %v2475_v31 }
 0x709   :  { %v2478_v34 = vrot.slane %v2477_v23, 2 }
 0x70b   :  { %v2479_v33 = vadd.f32 %v2478_v34, %v2477_v23 }
 0x70d   :  { %v2480_v25 = vrot.slane %v2479_v33, 1 }
 0x70f   :  { %v2481_v36 = vadd.f32 %v2480_v25, %v2479_v33 }
 0x711   :  { %v2482_v37 = vmul.f32 0.03125, %v2481_v36 }
 0x713   :  { %v2484_v38 = vadd.f32 1e-05, %v2482_v37 }
 0x715   :  { %3559 = vrsqrt.f32 %v2484_v38 }
 0x71f   :  { %v3560_v40 = vpop.eup %3559 }
 0x720   :  { %v2486_v32 = vmul.f32 %v3560_v40, %v2483_v35 }
 0x722   :  { %v2488_v39 = vmul.f32 %v2486_v32, %v2464_v12  ;;  %v2494_v43 = vrot.slane %v2486_v32, %v4021_v15 }
 0x724   :  { %v2489_v44 = vsub.f32 %v2487_v42, %v2488_v39  ;;  %v2497_v45 = vmul.f32 %v2494_v43, %v2442_v4  ;;  %v2496_v46 = vmul.f32 %v2494_v43, %v2439_v3  ;;  %v2498_v58 = vmul.f32 %v3261_v2, %v2494_v43 }
 0x725   :  { %v2499_v18 = vmul.f32 %v3262_v53, %v2494_v43 }
 0x726   :  { %v2504_v16 = vrot.slane %v2489_v44, %v4021_v15 }
 0x728   :  { %v2507_v20 = vadd.f32 %v2504_v16, %v2497_v45  ;;  %v2506_v48 = vadd.f32 %v2504_v16, %v2496_v46  ;;  %v2508_v59 = vadd.f32 %v2504_v16, %v2498_v58  ;;  %v2509_v49 = vadd.f32 %v2504_v16, %v2499_v18 }
 0x72a   :  { %v2511_v51 = vmax.f32 %v2507_v20, 0.0  ;;  %v2510_v47 = vmax.f32 %v2506_v48, 0.0  ;;  %v2512_v55 = vmax.f32 %v2508_v59, 0.0  ;;  %v2513_v57 = vmax.f32 %v2509_v49, 0.0 }
 0x72c   :  { %v2514_v50 = vpack.c.bf16 %v2511_v51, %v2510_v47  ;;  %v2515_v60 = vpack.c.bf16 %v2513_v57, %v2512_v55 }
 0x72e   :  { %3279 = vmatprep.mubr.bf16.mxu1 %v2514_v50 }
 0x72f   :  { %3280 = vmatmul.mubr.bf16.vlgmr.msra.gmra.mrb[28].mxu1 %v2515_v60 }
 0x730   :  { %3586 = shalt.err (!%p3583_p9)
}
 0x731   :  { %s3587_s18 = scalar_lea.hbm %s3828_s30, 128 }
 0x732   :  { %p3588_p10 = scmp.ne.s32.totalorder %s3828_s30, %s3587_s18  ;;  %p3591_p11 = scmp.lt.u32.totalorder %s3587_s18, %s3828_s30 }
 0x734   :  { %p3593_p12 = pnand %p3591_p11, %p3588_p10 }
 0x736   :  { %3596 = shalt.err (!%p3593_p12)
}
 0x737   :  { %s3662_s22 = smov 64   ;;  %s3663_s23 = smov 4   ;;  %v2657_v27 = vld [vmem:[%s3813_s24] sm:$0x1] }
 0x738   :  { %2731 = dma.vmem_to_hbm [thread:$0]  %s2726_s15, 128, %s3828_s30, [#allocation7], %s3662_s22, %s3662_s22, %s3663_s23  }
 0x739   :  { %v2661_v33 = vld [vmem:[%s3818_s27] sm:$0x1]  ;;  %s3664_s30 = smov [#allocation5]  }
 0x73a   :  { %s2713_s26 = sshll.u32 %s3664_s30, 4  ;;  %s2714_s26 = int_to_ptr.vmem [resolvable:$true] %s2713_s26 }
 0x73b   :  { %s3597_s24 = scalar_lea.vmem %s2714_s26, 256  ;;  %p3602_p0 = scmp.lt.s32.totalorder %s2714_s26, %s2714_s26 }
 0x73c   :  { %p3598_p13 = scmp.ne.s32.totalorder %s2714_s26, %s3597_s24  ;;  %p3603_p1 = scmp.lt.s32.totalorder %s3597_s24, %s3597_s24 }
 0x73e   :  { %p3604_p2 = por %p3603_p1, %p3602_p0 }
 0x740   :  { %p3605_p3 = pnand %p3604_p2, %p3598_p13 }
 0x802   :  { %v3281_v19 = vpop.f32.mrb[28].mxu1 }
 0x803   :  { %v2614_v22 = vpop.f32.mrb[29].mxu1 }
 0x804   :  { %v3282_v61 = vpop.f32.mrb[30].mxu1 }
 0x805   :  { %v2617_v62 = vpop.f32.mrb[31].mxu1 }
 0x806   :  { %v2629_v63 = vadd.f32 %v2617_v62, %v2614_v22 }
 0x808   :  { %v2630_v52 = vadd.f32 %v3281_v19, %v2629_v63 }
 0x80a   :  { %v2631_v0 = vadd.f32 %v3282_v61, %v2630_v52 }
 0x80c   :  { %v2632_v1 = vrot.slane %v2631_v0, 4 }
 0x80e   :  { %v2633_v2 = vadd.f32 %v2632_v1, %v2631_v0 }
 0x810   :  { %v2634_v3 = vrot.slane %v2633_v2, 2 }
 0x812   :  { %v2635_v53 = vadd.f32 %v2634_v3, %v2633_v2 }
 0x814   :  { %v2636_v4 = vrot.slane %v2635_v53, 1 }
 0x816   :  { %v2637_v54 = vadd.f32 %v2636_v4, %v2635_v53 }
 0x818   :  { %v2638_v5 = vmul.f32 0.03125, %v2637_v54 }
 0x81a   :  { %v2639_v41 = vsub.f32 %v2614_v22, %v2638_v5  ;;  %v2640_v7 = vsub.f32 %v2617_v62, %v2638_v5  ;;  %v2641_v8 = vsub.f32 %v3281_v19, %v2638_v5  ;;  %v2642_v9 = vsub.f32 %v3282_v61, %v2638_v5 }
 0x81c   :  { %v2643_v6 = vmul.f32 %v2639_v41, %v2639_v41  ;;  %v2644_v10 = vmul.f32 %v2640_v7, %v2640_v7  ;;  %v2645_v11 = vmul.f32 %v2641_v8, %v2641_v8  ;;  %v2646_v13 = vmul.f32 %v2642_v9, %v2642_v9 }
 0x81e   :  { %v2647_v12 = vadd.f32 %v2644_v10, %v2643_v6 }
 0x820   :  { %v2648_v56 = vadd.f32 %v2647_v12, %v2645_v11 }
 0x822   :  { %v2649_v21 = vadd.f32 %v2648_v56, %v2646_v13 }
 0x824   :  { %v2650_v26 = vrot.slane %v2649_v21, 4 }
 0x826   :  { %v2651_v28 = vadd.f32 %v2650_v26, %v2649_v21 }
 0x828   :  { %v2652_v29 = vrot.slane %v2651_v28, 2 }
 0x82a   :  { %v2653_v14 = vadd.f32 %v2652_v29, %v2651_v28 }
 0x82c   :  { %v2654_v30 = vrot.slane %v2653_v14, 1 }
 0x82e   :  { %v2655_v17 = vadd.f32 %v2654_v30, %v2653_v14 }
 0x830   :  { %v2656_v24 = vmul.f32 0.03125, %v2655_v17 }
 0x832   :  { %v2658_v31 = vadd.f32 1e-05, %v2656_v24 }
 0x834   :  { %3561 = vrsqrt.f32 %v2658_v31 }
 0x83e   :  { %v3562_v23 = vpop.eup %3561 }
 0x83f   :  { %v2660_v34 = vmul.f32 %v3562_v23, %v2657_v27 }
 0x841   :  { %v2662_v25 = vmul.f32 %v2660_v34, %v2638_v5  ;;  %v2668_v36 = vrot.slane %v2660_v34, %v4021_v15 }
 0x843   :  { %v2663_v37 = vsub.f32 %v2661_v33, %v2662_v25  ;;  %v2671_v38 = vmul.f32 %v2668_v36, %v2617_v62  ;;  %v2670_v35 = vmul.f32 %v2668_v36, %v2614_v22  ;;  %v2672_v40 = vmul.f32 %v3281_v19, %v2668_v36 }
 0x844   :  { %v2673_v32 = vmul.f32 %v3282_v61, %v2668_v36 }
 0x845   :  { %v2678_v42 = vrot.slane %v2663_v37, %v4021_v15 }
 0x847   :  { %v2681_v39 = vadd.f32 %v2678_v42, %v2671_v38  ;;  %v2680_v43 = vadd.f32 %v2678_v42, %v2670_v35  ;;  %v2682_v44 = vadd.f32 %v2678_v42, %v2672_v40  ;;  %v2683_v45 = vadd.f32 %v2678_v42, %v2673_v32 }
 0x849   :  { %v2685_v46 = vmax.f32 %v2681_v39, 0.0  ;;  %v2684_v58 = vmax.f32 %v2680_v43, 0.0  ;;  %v2686_v18 = vmax.f32 %v2682_v44, 0.0  ;;  %v2687_v16 = vmax.f32 %v2683_v45, 0.0 }
 0x84b   :  { %v2974_v20 = vpack.c.bf16 %v2685_v46, %v2684_v58  ;;  %v2979_v48 = vpack.c.bf16 %v2687_v16, %v2686_v18 }
 0x84d   :  { %2975 = vst [vmem:[#allocation5] sm:$0xff] %v2974_v20   ;;  %2981 = vst [vmem:[#allocation5 + $0x8] sm:$0xff] %v2979_v48  }
 0x84e   :  { %3608 = shalt.err (!%p3605_p3)
}
 0x84f   :  { %s3609_s27 = scalar_lea.hbm %s3823_s25, 256 }
 0x850   :  { %p3610_p4 = scmp.ne.s32.totalorder %s3823_s25, %s3609_s27  ;;  %p3613_p5 = scmp.lt.u32.totalorder %s3609_s27, %s3823_s25 }
 0x852   :  { %p3615_p6 = pnand %p3613_p5, %p3610_p4 }
 0x854   :  { %3618 = shalt.err (!%p3615_p6)
}
 0x855   :  { %2719 = dma.vmem_to_hbm [thread:$0]  %s2714_s26, 256, %s3823_s25, [#allocation3], %s3662_s22, %s3662_s22, %s3663_s23  }
 0x856   :  { %3621 = dma.done.wait [#allocation3], 256  }
 0x857   :  { %3622 = vsyncadd [#allocation3], 4294967040 }
 0x858   :  { %3623 = dma.done.wait [#allocation7], 128  }
 0x859   :  { %3624 = vsyncadd [#allocation7], 4294967168 }
 0x85a   :  { %2738 = vsyncpa [#allocation3], 1 }
 0x85b   :  { %2739 = vsyncpa [#allocation7], 1 }
 0x85c   :  { %2740 = vsyncpa [#allocation4], 1 }

</bundles_post_ra>
